<compile_context>
chip_gen: v7x
topology: tpu7x:2x2x1
jax: 0.10.0
libtpu: 0.0.40
codegen_flags: <defaults>
</compile_context>

<pallas_src>
import jax
import jax.numpy as jnp
from jax.experimental import pallas as pl
from jax.experimental.pallas import tpu as pltpu

BN_EPS = 1e-5


# ----------------------------------------------------------------------------
# In-kernel helper: 3x3 / stride-1 / pad-1 conv of the (H, W, F) lateral.
# bf16 MXU operands, f32 accumulation in a VMEM scratch.
# ----------------------------------------------------------------------------
def _conv3x3_same(lat3d, w3_ref, b3_ref, pad_scr, wide_scr, acc_scr, H, W, F):
    # Zero only the 1-pixel border; the interior is fully overwritten every
    # grid step (correct even when the batch axis is core-sharded).
    pad_scr[0:1, :, :] = jnp.zeros((1, W + 2, F), jnp.bfloat16)
    pad_scr[H + 1:H + 2, :, :] = jnp.zeros((1, W + 2, F), jnp.bfloat16)
    pad_scr[:, 0:1, :] = jnp.zeros((H + 2, 1, F), jnp.bfloat16)
    pad_scr[:, W + 1:W + 2, :] = jnp.zeros((H + 2, 1, F), jnp.bfloat16)
    pad_scr[1:H + 1, 1:W + 1, :] = lat3d.astype(jnp.bfloat16)

    # Width expansion (im2col): wide[y, x, kx*F:(kx+1)*F] = pad[y, x+kx, :]
    # TODO(synk): on v5e the kx=1,2 copies are sublane-misaligned; if vst/XLU
    #             binds, switch to a flattened (H+2, (W+2)*F) pad layout.
    for kx in range(3):
        wide_scr[:, :, kx * F:(kx + 1) * F] = pad_scr[:, kx:kx + W, :]

    # 3 row-GEMMs with K = 3*F, accumulated into an explicit f32 VMEM scratch.
    acc_scr[...] = jnp.dot(wide_scr[0:H].reshape(H * W, 3 * F), w3_ref[0],
                           preferred_element_type=jnp.float32)
    for ky in range(1, 3):
        acc_scr[...] += jnp.dot(wide_scr[ky:ky + H].reshape(H * W, 3 * F),
                                w3_ref[ky], preferred_element_type=jnp.float32)
    return (acc_scr[...] + b3_ref[...]).reshape(H, W, F)


# ----------------------------------------------------------------------------
# Kernel 1: P5 level = SimpleFPA (conv_master + GAP/conv_gpb, BN folded)
#           followed by the P5_2 3x3 conv.
# ----------------------------------------------------------------------------
def fpa_p5_kernel(x_ref, wm_ref, bm_ref, wg_ref, bg_ref, w3_ref, b3_ref,
                  lat_ref, out_ref, pad_scr, wide_scr, acc_scr):
    H, W, F = lat_ref.shape[1], lat_ref.shape[2], lat_ref.shape[3]
    C = x_ref.shape[3]

    x2d = x_ref[0].reshape(H * W, C)          # bf16 backbone features

    # conv_master: 1x1 conv (BN folded into bf16 weights) + bias + ReLU
    master = jnp.maximum(
        jnp.dot(x2d, wm_ref[...], preferred_element_type=jnp.float32)
        + bm_ref[...], 0.0)

    # conv_gpb: global average pool (f32) -> 1x1 conv (BN folded) + bias + ReLU
    gap = jnp.sum(x2d.astype(jnp.float32), axis=0, keepdims=True) * (1.0 / (H * W))
    gpb = jnp.maximum(
        jnp.dot(gap.astype(jnp.bfloat16), wg_ref[...],
                preferred_element_type=jnp.float32) + bg_ref[...], 0.0)

    lat3d = (master + gpb).reshape(H, W, F)   # (1,F) gpb broadcasts over rows
    lat_ref[0] = lat3d
    out_ref[0] = _conv3x3_same(lat3d, w3_ref, b3_ref, pad_scr, wide_scr,
                               acc_scr, H, W, F)


# ----------------------------------------------------------------------------
# Kernel 2: P4 / P3 level = 1x1 lateral conv (+bias) + in-kernel 2x nearest
#           upsample of the half-res top-down lateral + add, then 3x3 conv.
# ----------------------------------------------------------------------------
def _fpn_level_body(x_ref, top_ref, w1_ref, b1_ref, w3_ref, b3_ref,
                    lat_ref, out_ref, upw_scr, pad_scr, wide_scr, acc_scr):
    H, W, F = out_ref.shape[1], out_ref.shape[2], out_ref.shape[3]
    Hh, Wh = H // 2, W // 2
    C = x_ref.shape[3]

    # 1x1 lateral conv (+bias): bf16 MXU, f32 accumulate.
    x2d = x_ref[0].reshape(H * W, C)
    lat2d = (jnp.dot(x2d, w1_ref[...], preferred_element_type=jnp.float32)
             + b1_ref[...])

    # In-kernel 2x nearest upsample of the (Hh, Wh, F) top-down input:
    #   width duplication via column-pair slice stores into a VMEM scratch,
    #   height duplication via a leading-dim broadcast in the add below.
    t = top_ref[0]                                     # (Hh, Wh, F) f32
    for xh in range(Wh):
        col = t[:, xh:xh + 1, :]                       # (Hh, 1, F)
        upw_scr[:, 2 * xh:2 * xh + 1, :] = col
        upw_scr[:, 2 * xh + 1:2 * xh + 2, :] = col
    tw = upw_scr[...]                                  # (Hh, W, F)

    lat3d = (lat2d.reshape(Hh, 2, W, F) + tw[:, None, :, :]).reshape(H, W, F)

    if lat_ref is not None:
        lat_ref[0] = lat3d
    out_ref[0] = _conv3x3_same(lat3d, w3_ref, b3_ref, pad_scr, wide_scr,
                               acc_scr, H, W, F)


def fpn_level_kernel(x_ref, top_ref, w1_ref, b1_ref, w3_ref, b3_ref,
                     lat_ref, out_ref, upw_scr, pad_scr, wide_scr, acc_scr):
    _fpn_level_body(x_ref, top_ref, w1_ref, b1_ref, w3_ref, b3_ref,
                    lat_ref, out_ref, upw_scr, pad_scr, wide_scr, acc_scr)


def fpn_last_level_kernel(x_ref, top_ref, w1_ref, b1_ref, w3_ref, b3_ref,
                          out_ref, upw_scr, pad_scr, wide_scr, acc_scr):
    _fpn_level_body(x_ref, top_ref, w1_ref, b1_ref, w3_ref, b3_ref,
                    None, out_ref, upw_scr, pad_scr, wide_scr, acc_scr)


# ----------------------------------------------------------------------------
# pallas_call wrappers (grid over batch, "parallel" for megacore sharding)
# ----------------------------------------------------------------------------
def _compiler_params():
    return pltpu.CompilerParams(
        dimension_semantics=("parallel",),
        vmem_limit_bytes=32 * 1024 * 1024)   # usage is only a few MiB here


def _call_fpa_p5(x5, wm, bm, wg, bg, w3_hwio, b3):
    N, H, W, C = x5.shape
    F = wm.shape[1]
    w3rows = w3_hwio.reshape(3, 3 * F, F).astype(jnp.bfloat16)
    return pl.pallas_call(
        fpa_p5_kernel,
        out_shape=(jax.ShapeDtypeStruct((N, H, W, F), jnp.float32),
                   jax.ShapeDtypeStruct((N, H, W, F), jnp.float32)),
        grid_spec=pltpu.PrefetchScalarGridSpec(
            num_scalar_prefetch=0,
            grid=(N,),
            in_specs=[
                pl.BlockSpec((1, H, W, C), lambda n: (n, 0, 0, 0)),
                pl.BlockSpec((C, F), lambda n: (0, 0)),
                pl.BlockSpec((1, F), lambda n: (0, 0)),
                pl.BlockSpec((C, F), lambda n: (0, 0)),
                pl.BlockSpec((1, F), lambda n: (0, 0)),
                pl.BlockSpec((3, 3 * F, F), lambda n: (0, 0, 0)),
                pl.BlockSpec((1, F), lambda n: (0, 0)),
            ],
            out_specs=[pl.BlockSpec((1, H, W, F), lambda n: (n, 0, 0, 0)),
                       pl.BlockSpec((1, H, W, F), lambda n: (n, 0, 0, 0))],
            scratch_shapes=[pltpu.VMEM((H + 2, W + 2, F), jnp.bfloat16),
                            pltpu.VMEM((H + 2, W, 3 * F), jnp.bfloat16),
                            pltpu.VMEM((H * W, F), jnp.float32)],
        ),
        compiler_params=_compiler_params(),
    )(x5, wm, bm.reshape(1, F), wg, bg.reshape(1, F), w3rows, b3.reshape(1, F))


def _call_fpn_level(x, top, w1, b1, w3_hwio, b3, *, emit_lateral):
    N, H, W, C = x.shape
    F = w1.shape[1]
    Hh, Wh = H // 2, W // 2
    w1 = w1.astype(jnp.bfloat16)
    w3rows = w3_hwio.reshape(3, 3 * F, F).astype(jnp.bfloat16)

    out_sd = jax.ShapeDtypeStruct((N, H, W, F), jnp.float32)
    out_spec = pl.BlockSpec((1, H, W, F), lambda n: (n, 0, 0, 0))
    if emit_lateral:
        kernel, out_shape, out_specs = fpn_level_kernel, (out_sd, out_sd), [out_spec, out_spec]
    else:
        kernel, out_shape, out_specs = fpn_last_level_kernel, out_sd, out_spec

    return pl.pallas_call(
        kernel,
        out_shape=out_shape,
        grid_spec=pltpu.PrefetchScalarGridSpec(
            num_scalar_prefetch=0,
            grid=(N,),
            in_specs=[
                pl.BlockSpec((1, H, W, C), lambda n: (n, 0, 0, 0)),
                pl.BlockSpec((1, Hh, Wh, F), lambda n: (n, 0, 0, 0)),
                pl.BlockSpec((C, F), lambda n: (0, 0)),
                pl.BlockSpec((1, F), lambda n: (0, 0)),
                pl.BlockSpec((3, 3 * F, F), lambda n: (0, 0, 0)),
                pl.BlockSpec((1, F), lambda n: (0, 0)),
            ],
            out_specs=out_specs,
            scratch_shapes=[pltpu.VMEM((Hh, W, F), jnp.float32),
                            pltpu.VMEM((H + 2, W + 2, F), jnp.bfloat16),
                            pltpu.VMEM((H + 2, W, 3 * F), jnp.bfloat16),
                            pltpu.VMEM((H * W, F), jnp.float32)],
        ),
        compiler_params=_compiler_params(),
    )(x, top, w1, b1.reshape(1, F), w3rows, b3.reshape(1, F))


# ----------------------------------------------------------------------------
# Full PyramidFeatures forward (NCHW in / NCHW out, like the PyTorch module)
# ----------------------------------------------------------------------------
def _fold_bn(w, bn):
    gamma, beta, mean, var = bn
    s = gamma / jnp.sqrt(var + BN_EPS)
    return w * s[None, :], beta - mean * s


def _up2(x_nhwc):   # nearest 2x upsample (used only by the plain-JAX reference)
    return jnp.repeat(jnp.repeat(x_nhwc, 2, axis=1), 2, axis=2)


def pyramid_features_forward(b3, b4, b5, p):
    # NCHW -> NHWC; cast backbone features to bf16 (fused with the transpose).
    b3 = jnp.transpose(b3, (0, 2, 3, 1)).astype(jnp.bfloat16)
    b4 = jnp.transpose(b4, (0, 2, 3, 1)).astype(jnp.bfloat16)
    b5 = jnp.transpose(b5, (0, 2, 3, 1)).astype(jnp.bfloat16)

    # one-time BN folding for the two SimpleFPA 1x1 convs (eval-mode BN)
    wm, bm = _fold_bn(p['wm'], p['bn_m'])
    wg, bg = _fold_bn(p['wg'], p['bn_g'])
    wm = wm.astype(jnp.bfloat16)
    wg = wg.astype(jnp.bfloat16)

    lat5, p5 = _call_fpa_p5(b5, wm, bm, wg, bg, p['w52'], p['b52'])
    lat4, p4 = _call_fpn_level(b4, lat5, p['w41'], p['b41'], p['w42'], p['b42'],
                               emit_lateral=True)
    p3 = _call_fpn_level(b3, lat4, p['w31'], p['b31'], p['w32'], p['b32'],
                         emit_lateral=False)

    to_nchw = lambda t: jnp.transpose(t, (0, 3, 1, 2))
    return to_nchw(p3), to_nchw(p4), to_nchw(p5)


# ----------------------------------------------------------------------------
# Plain-JAX f32 reference (lax conv / einsum, explicit BN) for correctness
# ----------------------------------------------------------------------------
def ref_pyramid_features(b3, b4, b5, p):
    HI = jax.lax.Precision.HIGHEST
    b3 = jnp.transpose(b3, (0, 2, 3, 1))
    b4 = jnp.transpose(b4, (0, 2, 3, 1))
    b5 = jnp.transpose(b5, (0, 2, 3, 1))

    def conv1x1(x, w):
        return jnp.einsum('nhwc,cf->nhwf', x, w, precision=HI)

    def conv3x3(x, w_hwio, b):
        dn = jax.lax.conv_dimension_numbers(x.shape, w_hwio.shape,
                                            ('NHWC', 'HWIO', 'NHWC'))
        y = jax.lax.conv_general_dilated(x, w_hwio, (1, 1), 'SAME',
                                         dimension_numbers=dn, precision=HI)
        return y + b

    def bn(x, params):
        gamma, beta, mean, var = params
        return (x - mean) / jnp.sqrt(var + BN_EPS) * gamma + beta

    # SimpleFPA (P5_1)
    xm = jnp.maximum(bn(conv1x1(b5, p['wm']), p['bn_m']), 0.0)
    gap = jnp.mean(b5, axis=(1, 2), keepdims=True)
    xg = jnp.maximum(bn(conv1x1(gap, p['wg']), p['bn_g']), 0.0)
    lat5 = xm + xg
    p5 = conv3x3(lat5, p['w52'], p['b52'])

    lat4 = conv1x1(b4, p['w41']) + p['b41'] + _up2(lat5)
    p4 = conv3x3(lat4, p['w42'], p['b42'])

    lat3 = conv1x1(b3, p['w31']) + p['b31'] + _up2(lat4)
    p3 = conv3x3(lat3, p['w32'], p['b32'])

    to_nchw = lambda t: jnp.transpose(t, (0, 3, 1, 2))
    return to_nchw(p3), to_nchw(p4), to_nchw(p5)


if __name__ == "__main__":
    N = 2
    FEAT = 128                       # feature_size (lane-dense channel axis)
    B3_C, B4_C, B5_C = 64, 128, 256  # backbone channel counts
    H5 = W5 = 8                      # B4 = 16x16, B3 = 32x32 (small shapes)

    key = jax.random.PRNGKey(0)
    ks = jax.random.split(key, 20)

    def nrm(k, shape, scale):
        return scale * jax.random.normal(k, shape, jnp.float32)

    b3 = jax.random.normal(ks[0], (N, B3_C, 4 * H5, 4 * W5), jnp.float32)
    b4 = jax.random.normal(ks[1], (N, B4_C, 2 * H5, 2 * W5), jnp.float32)
    b5 = jax.random.normal(ks[2], (N, B5_C, H5, W5), jnp.float32)

    def bn_params(k):
        k1, k2, k3, k4 = jax.random.split(k, 4)
        gamma = 1.0 + 0.1 * jax.random.normal(k1, (FEAT,), jnp.float32)
        beta = 0.1 * jax.random.normal(k2, (FEAT,), jnp.float32)
        mean = 0.1 * jax.random.normal(k3, (FEAT,), jnp.float32)
        var = 1.0 + 0.1 * jnp.abs(jax.random.normal(k4, (FEAT,), jnp.float32))
        return gamma, beta, mean, var

    params = dict(
        # SimpleFPA: 1x1 convs (bias=False) + BN (eval mode) + ReLU
        wm=nrm(ks[3], (B5_C, FEAT), 0.05), bn_m=bn_params(ks[4]),
        wg=nrm(ks[5], (B5_C, FEAT), 0.05), bn_g=bn_params(ks[6]),
        # plain nn.Conv2d layers (bias=True); 3x3 weights are HWIO
        w52=nrm(ks[7], (3, 3, FEAT, FEAT), 0.03), b52=nrm(ks[8], (FEAT,), 0.1),
        w41=nrm(ks[9], (B4_C, FEAT), 0.05),       b41=nrm(ks[10], (FEAT,), 0.1),
        w42=nrm(ks[11], (3, 3, FEAT, FEAT), 0.03), b42=nrm(ks[12], (FEAT,), 0.1),
        w31=nrm(ks[13], (B3_C, FEAT), 0.05),      b31=nrm(ks[14], (FEAT,), 0.1),
        w32=nrm(ks[15], (3, 3, FEAT, FEAT), 0.03), b32=nrm(ks[16], (FEAT,), 0.1),
    )

    p3, p4, p5 = pyramid_features_forward(b3, b4, b5, params)
    p3 = jax.block_until_ready(p3)
    p4 = jax.block_until_ready(p4)
    p5 = jax.block_until_ready(p5)

    r3, r4, r5 = ref_pyramid_features(b3, b4, b5, params)

    assert p5.shape == (N, FEAT, H5, W5)
    assert p4.shape == (N, FEAT, 2 * H5, 2 * W5)
    assert p3.shape == (N, FEAT, 4 * H5, 4 * W5)
    # bf16 MXU operands vs f32 reference -> relaxed tolerance (feedback).
    for name, got, ref in (("P3", p3, r3), ("P4", p4, r4), ("P5", p5, r5)):
        err = float(jnp.max(jnp.abs(got - ref)))
        assert jnp.allclose(got, ref, atol=1e-1, rtol=1e-1), \
            f"{name} mismatch vs reference (max abs err {err})"

    print("KERNEL_OK")
</pallas_src>

<mosaic_0001>
module attributes {stable_mosaic.version = 11 : i64} {
  func.func @fpa_p5_kernel(%arg0: i32, %arg1: memref<1x8x8x256xbf16, #tpu.memory_space<vmem>>, %arg2: memref<256x128xbf16, #tpu.memory_space<vmem>>, %arg3: memref<1x128xf32, #tpu.memory_space<vmem>>, %arg4: memref<256x128xbf16, #tpu.memory_space<vmem>>, %arg5: memref<1x128xf32, #tpu.memory_space<vmem>>, %arg6: memref<3x384x128xbf16, #tpu.memory_space<vmem>>, %arg7: memref<1x128xf32, #tpu.memory_space<vmem>>, %arg8: memref<1x8x8x128xf32, #tpu.memory_space<vmem>>, %arg9: memref<1x8x8x128xf32, #tpu.memory_space<vmem>>, %arg10: memref<10x10x128xbf16, #tpu.memory_space<vmem>>, %arg11: memref<10x8x384xbf16, #tpu.memory_space<vmem>>, %arg12: memref<64x128xf32, #tpu.memory_space<vmem>>) attributes {dimension_semantics = [#tpu.dimension_semantics<parallel>], iteration_bounds = array<i64: 2>, scalar_prefetch = 0 : i64, scratch_operands = 3 : i64, tpu.core_type = #tpu.core_type<tc>, window_params = [{transform_indices = @transform_0, window_bounds = array<i64: 1, 8, 8, 256>}, {pipeline_mode = #tpu.pipeline_mode<synchronous>, transform_indices = @transform_1, window_bounds = array<i64: 256, 128>}, {pipeline_mode = #tpu.pipeline_mode<synchronous>, transform_indices = @transform_2, window_bounds = array<i64: 1, 128>}, {pipeline_mode = #tpu.pipeline_mode<synchronous>, transform_indices = @transform_3, window_bounds = array<i64: 256, 128>}, {pipeline_mode = #tpu.pipeline_mode<synchronous>, transform_indices = @transform_4, window_bounds = array<i64: 1, 128>}, {pipeline_mode = #tpu.pipeline_mode<synchronous>, transform_indices = @transform_5, window_bounds = array<i64: 3, 384, 128>}, {pipeline_mode = #tpu.pipeline_mode<synchronous>, transform_indices = @transform_6, window_bounds = array<i64: 1, 128>}, {transform_indices = @transform_7, window_bounds = array<i64: 1, 8, 8, 128>}, {transform_indices = @transform_8, window_bounds = array<i64: 1, 8, 8, 128>}]} {
    %c0 = arith.constant 0 : index
    %c0_0 = arith.constant 0 : index
    %c0_1 = arith.constant 0 : index
    %c0_2 = arith.constant 0 : index
    %0 = vector.load %arg1[%c0, %c0_0, %c0_1, %c0_2] : memref<1x8x8x256xbf16, #tpu.memory_space<vmem>>, vector<1x8x8x256xbf16>
    %1 = vector.shape_cast %0 : vector<1x8x8x256xbf16> to vector<8x8x256xbf16>
    %2 = vector.shape_cast %1 : vector<8x8x256xbf16> to vector<64x256xbf16>
    %c0_3 = arith.constant 0 : index
    %c0_4 = arith.constant 0 : index
    %3 = vector.load %arg2[%c0_3, %c0_4] : memref<256x128xbf16, #tpu.memory_space<vmem>>, vector<256x128xbf16>
    %cst = arith.constant dense<0.000000e+00> : vector<64x128xf32>
    %4 = tpu.matmul %2, %3, %cst {dimension_numbers = #tpu.dot_dimension_numbers<[1], [0], [0], [1], [0, 0, 1, 1], [], []>} : vector<64x256xbf16>, vector<256x128xbf16>, vector<64x128xf32> -> vector<64x128xf32>
    %c0_5 = arith.constant 0 : index
    %c0_6 = arith.constant 0 : index
    %5 = vector.load %arg3[%c0_5, %c0_6] : memref<1x128xf32, #tpu.memory_space<vmem>>, vector<1x128xf32>
    %6 = vector.broadcast %5 : vector<1x128xf32> to vector<64x128xf32>
    %7 = arith.addf %4, %6 : vector<64x128xf32>
    %cst_7 = arith.constant 0.000000e+00 : f32
    %8 = vector.broadcast %cst_7 : f32 to vector<64x128xf32>
    %9 = arith.maximumf %7, %8 : vector<64x128xf32>
    %10 = arith.extf %2 : vector<64x256xbf16> to vector<64x256xf32>
    %cst_8 = arith.constant dense<0.000000e+00> : vector<256xf32>
    %11 = vector.multi_reduction <add>, %10, %cst_8 [0] : vector<64x256xf32> to vector<256xf32>
    %12 = vector.shape_cast %11 : vector<256xf32> to vector<1x256xf32>
    %cst_9 = arith.constant 1.562500e-02 : f32
    %13 = vector.broadcast %cst_9 : f32 to vector<1x256xf32>
    %14 = arith.mulf %12, %13 : vector<1x256xf32>
    %15 = arith.truncf %14 : vector<1x256xf32> to vector<1x256xbf16>
    %c0_10 = arith.constant 0 : index
    %c0_11 = arith.constant 0 : index
    %16 = vector.load %arg4[%c0_10, %c0_11] : memref<256x128xbf16, #tpu.memory_space<vmem>>, vector<256x128xbf16>
    %cst_12 = arith.constant dense<0.000000e+00> : vector<1x128xf32>
    %17 = tpu.matmul %15, %16, %cst_12 {dimension_numbers = #tpu.dot_dimension_numbers<[1], [0], [0], [1], [0, 0, 1, 1], [], []>} : vector<1x256xbf16>, vector<256x128xbf16>, vector<1x128xf32> -> vector<1x128xf32>
    %c0_13 = arith.constant 0 : index
    %c0_14 = arith.constant 0 : index
    %18 = vector.load %arg5[%c0_13, %c0_14] : memref<1x128xf32, #tpu.memory_space<vmem>>, vector<1x128xf32>
    %19 = arith.addf %17, %18 : vector<1x128xf32>
    %cst_15 = arith.constant 0.000000e+00 : f32
    %20 = vector.broadcast %cst_15 : f32 to vector<1x128xf32>
    %21 = arith.maximumf %19, %20 : vector<1x128xf32>
    %22 = vector.broadcast %21 : vector<1x128xf32> to vector<64x128xf32>
    %23 = arith.addf %9, %22 : vector<64x128xf32>
    %24 = vector.shape_cast %23 : vector<64x128xf32> to vector<8x8x128xf32>
    %c0_16 = arith.constant 0 : index
    %c0_17 = arith.constant 0 : index
    %c0_18 = arith.constant 0 : index
    %c0_19 = arith.constant 0 : index
    %25 = vector.load %arg8[%c0_16, %c0_17, %c0_18, %c0_19] : memref<1x8x8x128xf32, #tpu.memory_space<vmem>>, vector<1x8x8x128xf32>
    %26 = vector.shape_cast %25 : vector<1x8x8x128xf32> to vector<8x8x128xf32>
    %27 = vector.shape_cast %24 : vector<8x8x128xf32> to vector<1x8x8x128xf32>
    tpu.vector_store %arg8[%c0_16, %c0_17, %c0_18, %c0_19], %27 {strides = array<i32>} : memref<1x8x8x128xf32, #tpu.memory_space<vmem>>, vector<1x8x8x128xf32>,
    %cst_20 = arith.constant 0.000000e+00 : bf16
    %28 = vector.broadcast %cst_20 : bf16 to vector<1x10x128xbf16>
    %c0_21 = arith.constant 0 : index
    %c0_22 = arith.constant 0 : index
    %c0_23 = arith.constant 0 : index
    %29 = vector.load %arg10[%c0_21, %c0_22, %c0_23] : memref<10x10x128xbf16, #tpu.memory_space<vmem>>, vector<1x10x128xbf16>
    tpu.vector_store %arg10[%c0_21, %c0_22, %c0_23], %28 {strides = array<i32>} : memref<10x10x128xbf16, #tpu.memory_space<vmem>>, vector<1x10x128xbf16>,
    %cst_24 = arith.constant 0.000000e+00 : bf16
    %30 = vector.broadcast %cst_24 : bf16 to vector<1x10x128xbf16>
    %c9 = arith.constant 9 : index
    %c0_25 = arith.constant 0 : index
    %c0_26 = arith.constant 0 : index
    %31 = vector.load %arg10[%c9, %c0_25, %c0_26] : memref<10x10x128xbf16, #tpu.memory_space<vmem>>, vector<1x10x128xbf16>
    tpu.vector_store %arg10[%c9, %c0_25, %c0_26], %30 {strides = array<i32>} : memref<10x10x128xbf16, #tpu.memory_space<vmem>>, vector<1x10x128xbf16>,
    %cst_27 = arith.constant 0.000000e+00 : bf16
    %32 = vector.broadcast %cst_27 : bf16 to vector<10x1x128xbf16>
    %c0_28 = arith.constant 0 : index
    %c0_29 = arith.constant 0 : index
    %c0_30 = arith.constant 0 : index
    %33 = vector.load %arg10[%c0_28, %c0_29, %c0_30] : memref<10x10x128xbf16, #tpu.memory_space<vmem>>, vector<10x1x128xbf16>
    tpu.vector_store %arg10[%c0_28, %c0_29, %c0_30], %32 {strides = array<i32>} : memref<10x10x128xbf16, #tpu.memory_space<vmem>>, vector<10x1x128xbf16>,
    %cst_31 = arith.constant 0.000000e+00 : bf16
    %34 = vector.broadcast %cst_31 : bf16 to vector<10x1x128xbf16>
    %c0_32 = arith.constant 0 : index
    %c9_33 = arith.constant 9 : index
    %c0_34 = arith.constant 0 : index
    %35 = vector.load %arg10[%c0_32, %c9_33, %c0_34] : memref<10x10x128xbf16, #tpu.memory_space<vmem>>, vector<10x1x128xbf16>
    tpu.vector_store %arg10[%c0_32, %c9_33, %c0_34], %34 {strides = array<i32>} : memref<10x10x128xbf16, #tpu.memory_space<vmem>>, vector<10x1x128xbf16>,
    %36 = arith.truncf %24 : vector<8x8x128xf32> to vector<8x8x128xbf16>
    %c1 = arith.constant 1 : index
    %c1_35 = arith.constant 1 : index
    %c0_36 = arith.constant 0 : index
    %37 = vector.load %arg10[%c1, %c1_35, %c0_36] : memref<10x10x128xbf16, #tpu.memory_space<vmem>>, vector<8x8x128xbf16>
    tpu.vector_store %arg10[%c1, %c1_35, %c0_36], %36 {strides = array<i32>} : memref<10x10x128xbf16, #tpu.memory_space<vmem>>, vector<8x8x128xbf16>,
    %c0_37 = arith.constant 0 : index
    %c0_38 = arith.constant 0 : index
    %c0_39 = arith.constant 0 : index
    %38 = vector.load %arg10[%c0_37, %c0_38, %c0_39] : memref<10x10x128xbf16, #tpu.memory_space<vmem>>, vector<10x8x128xbf16>
    %c0_40 = arith.constant 0 : index
    %c0_41 = arith.constant 0 : index
    %c0_42 = arith.constant 0 : index
    %39 = vector.load %arg11[%c0_40, %c0_41, %c0_42] : memref<10x8x384xbf16, #tpu.memory_space<vmem>>, vector<10x8x128xbf16>
    tpu.vector_store %arg11[%c0_40, %c0_41, %c0_42], %38 {strides = array<i32>} : memref<10x8x384xbf16, #tpu.memory_space<vmem>>, vector<10x8x128xbf16>,
    %c0_43 = arith.constant 0 : index
    %c1_44 = arith.constant 1 : index
    %c0_45 = arith.constant 0 : index
    %40 = vector.load %arg10[%c0_43, %c1_44, %c0_45] : memref<10x10x128xbf16, #tpu.memory_space<vmem>>, vector<10x8x128xbf16>
    %c0_46 = arith.constant 0 : index
    %c0_47 = arith.constant 0 : index
    %c128 = arith.constant 128 : index
    %41 = vector.load %arg11[%c0_46, %c0_47, %c128] : memref<10x8x384xbf16, #tpu.memory_space<vmem>>, vector<10x8x128xbf16>
    tpu.vector_store %arg11[%c0_46, %c0_47, %c128], %40 {strides = array<i32>} : memref<10x8x384xbf16, #tpu.memory_space<vmem>>, vector<10x8x128xbf16>,
    %c0_48 = arith.constant 0 : index
    %c2 = arith.constant 2 : index
    %c0_49 = arith.constant 0 : index
    %42 = vector.load %arg10[%c0_48, %c2, %c0_49] : memref<10x10x128xbf16, #tpu.memory_space<vmem>>, vector<10x8x128xbf16>
    %c0_50 = arith.constant 0 : index
    %c0_51 = arith.constant 0 : index
    %c256 = arith.constant 256 : index
    %43 = vector.load %arg11[%c0_50, %c0_51, %c256] : memref<10x8x384xbf16, #tpu.memory_space<vmem>>, vector<10x8x128xbf16>
    tpu.vector_store %arg11[%c0_50, %c0_51, %c256], %42 {strides = array<i32>} : memref<10x8x384xbf16, #tpu.memory_space<vmem>>, vector<10x8x128xbf16>,
    %c0_52 = arith.constant 0 : index
    %c0_53 = arith.constant 0 : index
    %c0_54 = arith.constant 0 : index
    %44 = vector.load %arg11[%c0_52, %c0_53, %c0_54] : memref<10x8x384xbf16, #tpu.memory_space<vmem>>, vector<8x8x384xbf16>
    %45 = vector.shape_cast %44 : vector<8x8x384xbf16> to vector<64x384xbf16>
    %c0_55 = arith.constant 0 : index
    %c0_56 = arith.constant 0 : index
    %c0_57 = arith.constant 0 : index
    %46 = vector.load %arg6[%c0_55, %c0_56, %c0_57] : memref<3x384x128xbf16, #tpu.memory_space<vmem>>, vector<1x384x128xbf16>
    %47 = vector.shape_cast %46 : vector<1x384x128xbf16> to vector<384x128xbf16>
    %cst_58 = arith.constant dense<0.000000e+00> : vector<64x128xf32>
    %48 = tpu.matmul %45, %47, %cst_58 {dimension_numbers = #tpu.dot_dimension_numbers<[1], [0], [0], [1], [0, 0, 1, 1], [], []>} : vector<64x384xbf16>, vector<384x128xbf16>, vector<64x128xf32> -> vector<64x128xf32>
    %c0_59 = arith.constant 0 : index
    %c0_60 = arith.constant 0 : index
    %49 = vector.load %arg12[%c0_59, %c0_60] : memref<64x128xf32, #tpu.memory_space<vmem>>, vector<64x128xf32>
    tpu.vector_store %arg12[%c0_59, %c0_60], %48 {strides = array<i32>} : memref<64x128xf32, #tpu.memory_space<vmem>>, vector<64x128xf32>,
    %c0_61 = arith.constant 0 : index
    %c0_62 = arith.constant 0 : index
    %50 = vector.load %arg12[%c0_61, %c0_62] : memref<64x128xf32, #tpu.memory_space<vmem>>, vector<64x128xf32>
    %c1_63 = arith.constant 1 : index
    %c0_64 = arith.constant 0 : index
    %c0_65 = arith.constant 0 : index
    %51 = vector.load %arg11[%c1_63, %c0_64, %c0_65] : memref<10x8x384xbf16, #tpu.memory_space<vmem>>, vector<8x8x384xbf16>
    %52 = vector.shape_cast %51 : vector<8x8x384xbf16> to vector<64x384xbf16>
    %c1_66 = arith.constant 1 : index
    %c0_67 = arith.constant 0 : index
    %c0_68 = arith.constant 0 : index
    %53 = vector.load %arg6[%c1_66, %c0_67, %c0_68] : memref<3x384x128xbf16, #tpu.memory_space<vmem>>, vector<1x384x128xbf16>
    %54 = vector.shape_cast %53 : vector<1x384x128xbf16> to vector<384x128xbf16>
    %cst_69 = arith.constant dense<0.000000e+00> : vector<64x128xf32>
    %55 = tpu.matmul %52, %54, %cst_69 {dimension_numbers = #tpu.dot_dimension_numbers<[1], [0], [0], [1], [0, 0, 1, 1], [], []>} : vector<64x384xbf16>, vector<384x128xbf16>, vector<64x128xf32> -> vector<64x128xf32>
    %56 = arith.addf %50, %55 : vector<64x128xf32>
    %c0_70 = arith.constant 0 : index
    %c0_71 = arith.constant 0 : index
    %57 = vector.load %arg12[%c0_70, %c0_71] : memref<64x128xf32, #tpu.memory_space<vmem>>, vector<64x128xf32>
    tpu.vector_store %arg12[%c0_70, %c0_71], %56 {strides = array<i32>} : memref<64x128xf32, #tpu.memory_space<vmem>>, vector<64x128xf32>,
    %c0_72 = arith.constant 0 : index
    %c0_73 = arith.constant 0 : index
    %58 = vector.load %arg12[%c0_72, %c0_73] : memref<64x128xf32, #tpu.memory_space<vmem>>, vector<64x128xf32>
    %c2_74 = arith.constant 2 : index
    %c0_75 = arith.constant 0 : index
    %c0_76 = arith.constant 0 : index
    %59 = vector.load %arg11[%c2_74, %c0_75, %c0_76] : memref<10x8x384xbf16, #tpu.memory_space<vmem>>, vector<8x8x384xbf16>
    %60 = vector.shape_cast %59 : vector<8x8x384xbf16> to vector<64x384xbf16>
    %c2_77 = arith.constant 2 : index
    %c0_78 = arith.constant 0 : index
    %c0_79 = arith.constant 0 : index
    %61 = vector.load %arg6[%c2_77, %c0_78, %c0_79] : memref<3x384x128xbf16, #tpu.memory_space<vmem>>, vector<1x384x128xbf16>
    %62 = vector.shape_cast %61 : vector<1x384x128xbf16> to vector<384x128xbf16>
    %cst_80 = arith.constant dense<0.000000e+00> : vector<64x128xf32>
    %63 = tpu.matmul %60, %62, %cst_80 {dimension_numbers = #tpu.dot_dimension_numbers<[1], [0], [0], [1], [0, 0, 1, 1], [], []>} : vector<64x384xbf16>, vector<384x128xbf16>, vector<64x128xf32> -> vector<64x128xf32>
    %64 = arith.addf %58, %63 : vector<64x128xf32>
    %c0_81 = arith.constant 0 : index
    %c0_82 = arith.constant 0 : index
    %65 = vector.load %arg12[%c0_81, %c0_82] : memref<64x128xf32, #tpu.memory_space<vmem>>, vector<64x128xf32>
    tpu.vector_store %arg12[%c0_81, %c0_82], %64 {strides = array<i32>} : memref<64x128xf32, #tpu.memory_space<vmem>>, vector<64x128xf32>,
    %c0_83 = arith.constant 0 : index
    %c0_84 = arith.constant 0 : index
    %66 = vector.load %arg12[%c0_83, %c0_84] : memref<64x128xf32, #tpu.memory_space<vmem>>, vector<64x128xf32>
    %c0_85 = arith.constant 0 : index
    %c0_86 = arith.constant 0 : index
    %67 = vector.load %arg7[%c0_85, %c0_86] : memref<1x128xf32, #tpu.memory_space<vmem>>, vector<1x128xf32>
    %68 = vector.broadcast %67 : vector<1x128xf32> to vector<64x128xf32>
    %69 = arith.addf %66, %68 : vector<64x128xf32>
    %70 = vector.shape_cast %69 : vector<64x128xf32> to vector<8x8x128xf32>
    %c0_87 = arith.constant 0 : index
    %c0_88 = arith.constant 0 : index
    %c0_89 = arith.constant 0 : index
    %c0_90 = arith.constant 0 : index
    %71 = vector.load %arg9[%c0_87, %c0_88, %c0_89, %c0_90] : memref<1x8x8x128xf32, #tpu.memory_space<vmem>>, vector<1x8x8x128xf32>
    %72 = vector.shape_cast %71 : vector<1x8x8x128xf32> to vector<8x8x128xf32>
    %73 = vector.shape_cast %70 : vector<8x8x128xf32> to vector<1x8x8x128xf32>
    tpu.vector_store %arg9[%c0_87, %c0_88, %c0_89, %c0_90], %73 {strides = array<i32>} : memref<1x8x8x128xf32, #tpu.memory_space<vmem>>, vector<1x8x8x128xf32>,
    return
  }
  func.func @transform_0(%arg0: i32) -> (i32, i32, i32, i32) {
    %c0_i32 = arith.constant 0 : i32
    %c0_i32_0 = arith.constant 0 : i32
    %c0_i32_1 = arith.constant 0 : i32
    %c0_i32_2 = arith.constant 0 : i32
    return %arg0, %c0_i32, %c0_i32_0, %c0_i32_1 : i32, i32, i32, i32
  }
  func.func @transform_1(%arg0: i32) -> (i32, i32) {
    %c0_i32 = arith.constant 0 : i32
    %c0_i32_0 = arith.constant 0 : i32
    %c0_i32_1 = arith.constant 0 : i32
    return %c0_i32, %c0_i32_0 : i32, i32
  }
  func.func @transform_2(%arg0: i32) -> (i32, i32) {
    %c0_i32 = arith.constant 0 : i32
    %c0_i32_0 = arith.constant 0 : i32
    %c0_i32_1 = arith.constant 0 : i32
    return %c0_i32, %c0_i32_0 : i32, i32
  }
  func.func @transform_3(%arg0: i32) -> (i32, i32) {
    %c0_i32 = arith.constant 0 : i32
    %c0_i32_0 = arith.constant 0 : i32
    %c0_i32_1 = arith.constant 0 : i32
    return %c0_i32, %c0_i32_0 : i32, i32
  }
  func.func @transform_4(%arg0: i32) -> (i32, i32) {
    %c0_i32 = arith.constant 0 : i32
    %c0_i32_0 = arith.constant 0 : i32
    %c0_i32_1 = arith.constant 0 : i32
    return %c0_i32, %c0_i32_0 : i32, i32
  }
  func.func @transform_5(%arg0: i32) -> (i32, i32, i32) {
    %c0_i32 = arith.constant 0 : i32
    %c0_i32_0 = arith.constant 0 : i32
    %c0_i32_1 = arith.constant 0 : i32
    %c0_i32_2 = arith.constant 0 : i32
    return %c0_i32, %c0_i32_0, %c0_i32_1 : i32, i32, i32
  }
  func.func @transform_6(%arg0: i32) -> (i32, i32) {
    %c0_i32 = arith.constant 0 : i32
    %c0_i32_0 = arith.constant 0 : i32
    %c0_i32_1 = arith.constant 0 : i32
    return %c0_i32, %c0_i32_0 : i32, i32
  }
  func.func @transform_7(%arg0: i32) -> (i32, i32, i32, i32) {
    %c0_i32 = arith.constant 0 : i32
    %c0_i32_0 = arith.constant 0 : i32
    %c0_i32_1 = arith.constant 0 : i32
    %c0_i32_2 = arith.constant 0 : i32
    return %arg0, %c0_i32, %c0_i32_0, %c0_i32_1 : i32, i32, i32, i32
  }
  func.func @transform_8(%arg0: i32) -> (i32, i32, i32, i32) {
    %c0_i32 = arith.constant 0 : i32
    %c0_i32_0 = arith.constant 0 : i32
    %c0_i32_1 = arith.constant 0 : i32
    %c0_i32_2 = arith.constant 0 : i32
    return %arg0, %c0_i32, %c0_i32_0, %c0_i32_1 : i32, i32, i32, i32
  }
}

</mosaic_0001>

<bundles_post_ra>
// kernel: tpu_custom_call.1
= control target key start
LH: loop header
LB: loop body
LE: loop exit
PB: predicated region body
PF: predicated region fallthrough
CT: control target
= control target key end

     0   :  { %14 = vsyncpa [#allocation6], 0  ;;  %s4483_s0 = inlined_call_operand.hbm [shape: bf16[2,8,8,256], index: 0, kind: input, shape index: {}]   ;;  %s4484_s1 = inlined_call_operand.hbm [shape: bf16[256,128], index: 1, kind: input, shape index: {}]   ;;  %s4485_s2 = inlined_call_operand.vmem [shape: f32[1,128], index: 2, kind: input, shape index: {}]   ;;  %s4486_s3 = inlined_call_operand.hbm [shape: bf16[256,128], index: 3, kind: input, shape index: {}]   ;;  %s4487_s4 = inlined_call_operand.vmem [shape: f32[1,128], index: 4, kind: input, shape index: {}]   ;;  %s4488_s5 = inlined_call_operand.hbm [shape: bf16[3,384,128], index: 5, kind: input, shape index: {}]   ;;  %s4489_s6 = inlined_call_operand.vmem [shape: f32[1,128], index: 6, kind: input, shape index: {}]   ;;  %s4490_s7 = inlined_call_operand.hbm [shape: f32[2,8,8,128], index: 7, kind: output, shape index: {0}]   ;;  %s4491_s8 = inlined_call_operand.hbm [shape: f32[2,8,8,128], index: 8, kind: output, shape index: {1}]  }
   0x1   :  { %16 = vsyncpa [#allocation6 + $0x1], 0 }
   0x2   :  { %17 = vsyncpa [#allocation9], 0 }
   0x3   :  { %18 = vsyncpa [#allocation12], 0 }
   0x4   :  { %19 = vsyncpa [#allocation7], 0 }
   0x5   :  { %21 = vsyncpa [#allocation7 + $0x1], 0 }
   0x6   :  { %22 = vsyncpa [#allocation15], 0 }
   0x7   :  { %24 = vsyncpa [#allocation15 + $0x1], 0  ;;  %s3911_s27 = smov 0   ;;  %s3913_s28 = smov 0  }
   0x8   :  { %s3915_s29 = smov 0   ;;  %s3917_s30 = smov 0  }
   0x9 LB: > { %4497 = sst [smem:[#allocation21_spill]] %s3839_s27  ;;  %s3932_s9 = sadd.s32 4294967295, %s3851_s30   ;;  %s3851_s30 = sphi %s3917_s30, %s4530_s30   ;;  %s3847_s29 = sphi %s3915_s29, %s4529_s29   ;;  %s3843_s28 = sphi %s3913_s28, %s4528_s28   ;;  %s3839_s27 = sphi %s3911_s27, %s4527_s27  }
   0xa   : > { %s2877_s10 = sadd.s32 4294967294, %s3851_s30   ;;  %p50_p0 = scmp.ne.s32.totalorder %s3843_s28, %s3839_s27 }
   0xb   : > { %p4492_p1 = scmp.eq.s32.totalorder %s3932_s9, 0  ;;  %p206_p3 = scmp.eq.s32.totalorder %s2877_s10, 1 }
   0xc   : > { %p2878_p5 = scmp.ge.s32.totalorder %s3851_s30, 1  ;;  %p239_p7 = scmp.lt.s32.totalorder %s3851_s30, 3 }
   0xd   : > { %p3941_p4 = por %p4492_p1, %p50_p0  ;;  %p3946_p6 = por %p206_p3, %p50_p0 }
   0xe   : > { %p3951_p8 = pnand %p2878_p5, %p239_p7  ;;  %s3853_s14 = smov [#allocation8]  }
   0xf   : > { %s4498_s11 = scalar_select %p3941_p4, 1, 0 }
  0x10   : > { %s4499_s12 = scalar_select %p3946_p6, 1, 0 }
  0x11   : > { %s4501_s13 = scalar_select %p3951_p8, 1, 0 }
  0x12   : > { %4500 = sst [smem:[#allocation22_spill]] %s4499_s12  ;;  %s251_s15 = sshll.u32 %s3853_s14, 4  ;;  %s3955_s15 = int_to_ptr.vmem [resolvable:$true] %s251_s15 }
  0x13   : > { %p3428_p9 = pneg %p3951_p8  ;;  %s3854_s17 = smov [#allocation10]  }
  0x14   : > { %s267_s18 = sshll.u32 %s3854_s17, 4  ;;  %s3855_s19 = smov [#allocation11]   ;;  %s3966_s18 = int_to_ptr.vmem [resolvable:$true] %s267_s18 }
  0x15   : > { %p3962_p11 = pnand %p3428_p9, %p4492_p1  ;;  %s3968_s20 = sshll.u32 %s3855_s19, 4  ;;  %s284_s20 = int_to_ptr.vmem [resolvable:$true] %s3968_s20 }
  0x16   : > { %s3631_s23 = scalar_lea.hbm %s4484_s1, 2048 }
  0x17   : > { %p3632_p12 = scmp.ne.s32.totalorder %s4484_s1, %s3631_s23  ;;  %p3978_p13 = pneg %p3962_p11 }
  0x18   : > { %p3638_p5 = scmp.lt.u32.totalorder %s3631_s23, %s4484_s1 }
  0x19   : > { %p3634_p0 = pnand %p3978_p13, %p3632_p12 }
  0x1b   : > { %p3635_p3 = pneg %p3634_p0 }
  0x1d   : > { %p3640_p7 = pnand %p3638_p5, %p3635_p3 }
  0x1f   : > { %3643 = shalt.err (!%p3640_p7)
}
  0x20   : > { %s3644_s17 = scalar_lea.vmem %s3955_s15, 2048  ;;  %p3652_p2 = scmp.lt.s32.totalorder %s3955_s15, %s3955_s15 }
  0x21   : > { %p3645_p9 = scmp.ne.s32.totalorder %s3955_s15, %s3644_s17  ;;  %p3653_p6 = scmp.lt.s32.totalorder %s3644_s17, %s3644_s17 }
  0x23   : > { %p3647_p10 = pnand %p3645_p9, %p3978_p13  ;;  %p3654_p12 = por %p3653_p6, %p3652_p2 }
  0x25   : > { %p3648_p1 = pneg %p3647_p10 }
  0x27   : > { %p3655_p0 = pnand %p3654_p12, %p3648_p1 }
  0x29   : > { %3658 = shalt.err (!%p3655_p0)
}
  0x2a   : > { %s3856_s19 = smov 64   ;;  %s3857_s21 = smov 4  }
  0x2b   : > { %3431 = dma.hbm_to_vmem [thread:$0]  (!%p3962_p11), %s4484_s1, 2048, %s3955_s15, [#allocation9], %s3856_s19, %s3856_s19, %s3857_s21  }
  0x2c   : > { %s3659_s10 = scalar_lea.hbm %s4486_s3, 2048 }
  0x2d   : > { %p3660_p1 = scmp.ne.s32.totalorder %s4486_s3, %s3659_s10  ;;  %p3666_p10 = scmp.lt.u32.totalorder %s3659_s10, %s4486_s3 }
  0x2f   : > { %p3662_p2 = pnand %p3660_p1, %p3978_p13 }
  0x31   : > { %p3663_p6 = pneg %p3662_p2 }
  0x33   : > { %p3668_p3 = pnand %p3666_p10, %p3663_p6 }
  0x35   : > { %3671 = shalt.err (!%p3668_p3)
}
  0x36   : > { %s3672_s15 = scalar_lea.vmem %s3966_s18, 2048  ;;  %p3680_p12 = scmp.lt.s32.totalorder %s3966_s18, %s3966_s18 }
  0x37   : > { %p3673_p5 = scmp.ne.s32.totalorder %s3966_s18, %s3672_s15  ;;  %p3681_p0 = scmp.lt.s32.totalorder %s3672_s15, %s3672_s15 }
  0x39   : > { %p3675_p7 = pnand %p3673_p5, %p3978_p13  ;;  %p3682_p1 = por %p3681_p0, %p3680_p12 }
  0x3b   : > { %p3676_p9 = pneg %p3675_p7 }
  0x3d   : > { %p3683_p2 = pnand %p3682_p1, %p3676_p9 }
  0x3f   : > { %3686 = shalt.err (!%p3683_p2)
}
  0x40   : > { %3434 = dma.hbm_to_vmem [thread:$0]  (!%p3962_p11), %s4486_s3, 2048, %s3966_s18, [#allocation9], %s3856_s19, %s3856_s19, %s3857_s21  }
  0x41   : > { %s3687_s24 = scalar_lea.hbm %s4488_s5, 9216 }
  0x42   : > { %p3688_p6 = scmp.ne.s32.totalorder %s4488_s5, %s3687_s24  ;;  %p3694_p5 = scmp.lt.u32.totalorder %s3687_s24, %s4488_s5 }
  0x44   : > { %p3690_p10 = pnand %p3688_p6, %p3978_p13 }
  0x46   : > { %p3691_p3 = pneg %p3690_p10 }
  0x48   : > { %p3696_p7 = pnand %p3694_p5, %p3691_p3 }
  0x4a   : > { %3699 = shalt.err (!%p3696_p7)
}
  0x4b   : > { %s3700_s15 = scalar_lea.vmem %s284_s20, 9216  ;;  %p3708_p1 = scmp.lt.s32.totalorder %s284_s20, %s284_s20 }
  0x4c   : > { %p3701_p9 = scmp.ne.s32.totalorder %s284_s20, %s3700_s15  ;;  %p3709_p2 = scmp.lt.s32.totalorder %s3700_s15, %s3700_s15 }
  0x4e   : > { %p3703_p12 = pnand %p3701_p9, %p3978_p13  ;;  %p3710_p4 = por %p3709_p2, %p3708_p1 }
  0x50   : > { %p3704_p0 = pneg %p3703_p12 }
  0x52   : > { %p3711_p8 = pnand %p3710_p4, %p3704_p0 }
  0x54   : > { %3714 = shalt.err (!%p3711_p8)
}
  0x55   : > { %3437 = dma.hbm_to_vmem [thread:$0]  (!%p3962_p11), %s4488_s5, 9216, %s284_s20, [#allocation12], %s3856_s19, %s3856_s19, %s3857_s21  }
  0x56   : > { %s4051_s26 = sadd.s32 1, %s3851_s30   ;;  %s37_s12 = sadd.s32 1, %s3847_s29 }
  0x57   : > { %s34_s16 = ssub.s32 %s3851_s30, %s4051_s26  ;;  %p44_p8 = scmp.ne.s32.totalorder %s3847_s29, %s3843_s28 }
  0x58   : > { %p35_p4 = scmp.eq.s32.totalorder %s34_s16, 0  ;;  %p45_p13 = scmp.eq.s32.totalorder %s3851_s30, 0 }
  0x59   : > { %p3452_p6 = scmp.lt.s32.totalorder %s3851_s30, 2  ;;  %p4504_p3 = scmp.eq.s32.totalorder %s3932_s9, 1 }
  0x5a   : > { %s4061_s22 = scalar_select %p35_p4, %s3847_s29, %s37_s12  }
  0x5b   : > { %p46_p10 = por %p45_p13, %p44_p8  ;;  %p4065_p5 = por %p4504_p3, %p44_p8 }
  0x5c   : > { %s300_s24 = sand.u32 1, %s3847_s29   ;;  %s3069_s25 = sshll.u32 %s3851_s30, 10 }
  0x5d   : > { %s2883_s20 = sshll.u32 %s300_s24, 6  ;;  %s4074_s10 = scalar_lea.hbm %s4483_s0, %s3069_s25 }
  0x5e   : > { %s304_s14 = scalar_lea.vmem [#allocation5], %s2883_s20  ;;  %p4076_p11 = pnand %p3452_p6, %p46_p10 }
  0x5f   : > { %s311_s17 = sshll.u32 %s304_s14, 4  ;;  %s4082_s18 = scalar_lea.sflag [#allocation6], %s300_s24  ;;  %s4080_s17 = int_to_ptr.vmem [resolvable:$true] %s311_s17 }
  0x60   : > { %s3715_s27 = scalar_lea.hbm %s4074_s10, 1024  ;;  %p3717_p9 = pneg %p4076_p11 }
  0x61   : > { %p3716_p7 = scmp.ne.s32.totalorder %s4074_s10, %s3715_s27  ;;  %s3720_s25 = scalar_lea.hbm %s4483_s0, 2048 }
  0x62   : > { %p3721_p1 = scmp.lt.u32.totalorder %s4074_s10, %s4483_s0  ;;  %p3722_p2 = scmp.lt.u32.totalorder %s3720_s25, %s3715_s27 }
  0x63   : > { %p3718_p12 = pnand %p3717_p9, %p3716_p7  ;;  %p3724_p8 = scmp.lt.u32.totalorder %s3715_s27, %s4074_s10 }
  0x64   : > { %p3723_p4 = por %p3722_p2, %p3721_p1 }
  0x65   : > { %p3719_p0 = pneg %p3718_p12 }
  0x66   : > { %p3725_p13 = por %p3724_p8, %p3723_p4 }
  0x68   : > { %p3726_p6 = pnand %p3725_p13, %p3719_p0 }
  0x6a   : > { %3729 = shalt.err (!%p3726_p6)
}
  0x6b   : > { %s3730_s24 = scalar_lea.vmem %s4080_s17, 1024  ;;  %s3858_s21 = smov [#allocation5]  }
  0x6c   : > { %p3731_p10 = scmp.ne.s32.totalorder %s4080_s17, %s3730_s24  ;;  %s3735_s14 = sshll.u32 %s3858_s21, 4  ;;  %s3736_s14 = int_to_ptr.vmem [resolvable:$false] %s3735_s14 }
  0x6d   : > { %s3737_s16 = scalar_lea.vmem %s3736_s14, 2048  ;;  %p3738_p12 = scmp.lt.s32.totalorder %s4080_s17, %s3736_s14 }
  0x6e   : > { %p3733_p3 = pnand %p3731_p10, %p3717_p9  ;;  %p3739_p1 = scmp.lt.s32.totalorder %s3737_s16, %s3730_s24 }
  0x70   : > { %p3734_p7 = pneg %p3733_p3  ;;  %p3740_p2 = por %p3739_p1, %p3738_p12 }
  0x72   : > { %p3741_p4 = pnand %p3740_p2, %p3734_p7 }
  0x74   : > { %3744 = shalt.err (!%p3741_p4)
}
  0x75   : > { %s3859_s27 = smov 128   ;;  %s3860_s12 = smov 8  }
  0x76   : > { %3441 = dma.hbm_to_vmem [thread:$0]  (!%p4076_p11), %s4074_s10, 1024, %s4080_s17, %s4082_s18, %s3859_s27, %s3859_s27, %s3860_s12  }
  0x77   : > { %p4507_p9 = scmp.ne.s32.totalorder %s4501_s13, 0 }
  0x78   : > { %s4113_s25 = sand.u32 (!%p4507_p9), 1, %s3843_s28   ;;  %p4508_p0 = scmp.ne.s32.totalorder (!%p4507_p9), %s4498_s11, 0 }
  0x79   : > { %323 = sbr.rel (%p4507_p9) target bundleno = 775 (0x307), region = 48  ;;  %s4116_s20 = sshll.u32 (!%p4507_p9), %s4113_s25, 6 }
  0x7a   : > { %s326_s19 = scalar_lea.sflag (!%p4507_p9), [#allocation6], %s4113_s25  ;;  %s4120_s24 = scalar_lea.vmem (!%p4507_p9), [#allocation5], %s4116_s20 }
  0x80   : > { %3818 = dma.done.wait (%p4508_p0), %s326_s19, 1024  }
  0x81   : > { %3820 = vsyncadd (%p4508_p0), %s326_s19, 4294966272  ;;  %p4509_p11 = scmp.eq.s32.totalorder %s3932_s9, 0 }
  0x83   : > { %3822 = dma.done.wait (%p4509_p11), [#allocation9], 4096   ;;  %p4510_p8 = pmov %p4509_p11 }
  0x85   : > { %3824 = vsyncadd (%p4510_p8), [#allocation9], 4294963200  ;;  %p4511_p13 = pmov %p4510_p8 }
  0x86   : > { %p4512_p6 = pmov %p4510_p8 }
  0x87   : > { %3826 = dma.done.wait (%p4511_p13), [#allocation12], 9216  }
  0x88   : > { %3828 = vsyncadd (%p4512_p6), [#allocation12], 4294958080  ;;  %v3499_v0 = vld [vmem:[#allocation8 + $0x40] sm:$0xff]   ;;  %v3503_v4 = vld [vmem:[#allocation8 + $0x48] sm:$0xff]   ;;  %vm877_vm0 = vcmask 1040384   ;;  %vm1348_vm5 = vcmask 1042432  }
  0x89   : > { %v3500_v1 = vld [vmem:[#allocation10 + $0x40] sm:$0xff]   ;;  %3080 = vmatprep.subr.bf16.mxu0 %v3499_v0  ;;  %v3504_v5 = vld [vmem:[#allocation10 + $0x48] sm:$0xff]   ;;  %v3507_v8 = vld [vmem:[#allocation8 + $0x50] sm:$0xff]   ;;  %vm878_vm1 = vsmask.f32 256  ;;  %vm1349_vm6 = vcmask 1046532  }
  0x8a   : > { %v3501_v2 = vld [vmem:[#allocation8] sm:$0xff]   ;;  %3120 = vmatprep.subr.bf16.mxu1 %v3500_v1  ;;  %v3505_v6 = vld [vmem:[#allocation8 + $0x8] sm:$0xff]   ;;  %v3508_v9 = vld [vmem:[#allocation10 + $0x50] sm:$0xff]   ;;  %vm910_vm2 = vsmask.f32 7938  ;;  %vm1055_vm11 = vcmask 1043456  }
  0x8b   : > { %v3502_v3 = vld [vmem:[#allocation10] sm:$0xff]   ;;  %3081 = vmatpush3.bf16.msra.mxu0 %v3501_v2  ;;  %v3506_v7 = vld [vmem:[#allocation10 + $0x8] sm:$0xff]   ;;  %v3509_v10 = vld [vmem:[#allocation8 + $0x10] sm:$0xff]   ;;  %vm1145_vm8 = vsmask.f32 3328  ;;  %s4217_s15 = scalar_lea.vmem [#allocation13], %s4116_s20 }
  0x8c   : > { %3121 = vmatpush3.bf16.msra.mxu1 %v3502_v3  ;;  %3082 = vmatprep.subr.bf16.mxu0 %v3503_v4  ;;  %v3510_v11 = vld [vmem:[#allocation10 + $0x10] sm:$0xff]   ;;  %v3511_v12 = vld [vmem:[#allocation8 + $0x58] sm:$0xff]   ;;  %v3515_v16 = vld [vmem:[#allocation8 + $0x60] sm:$0xff]   ;;  %vm1146_vm9 = vsmask.f32 7440  ;;  %s3078_s18 = sshll.u32 %s3932_s9, 10 }
  0x8d   : > { %3122 = vmatprep.subr.bf16.mxu1 %v3504_v5  ;;  %v3512_v13 = vld [vmem:[#allocation10 + $0x58] sm:$0xff]   ;;  %v3516_v17 = vld [vmem:[#allocation10 + $0x60] sm:$0xff]   ;;  %v3519_v20 = vld [vmem:[#allocation8 + $0x68] sm:$0xff]   ;;  %s4382_s16 = scalar_lea.hbm %s4490_s7, %s3078_s18  ;;  %s2727_s27 = sshll.u32 %s4217_s15, 4  ;;  %s4385_s27 = int_to_ptr.vmem [resolvable:$true] %s2727_s27 }
  0x8e   : > { %v3513_v14 = vld [vmem:[#allocation8 + $0x18] sm:$0xff]   ;;  %v3517_v18 = vld [vmem:[#allocation8 + $0x20] sm:$0xff]   ;;  %v3520_v21 = vld [vmem:[#allocation10 + $0x68] sm:$0xff]   ;;  %s2709_s12 = scalar_lea.sflag [#allocation7], %s4113_s25  ;;  %s3745_s19 = scalar_lea.vmem %s4385_s27, 1024 }
  0x8f   : > { %3083 = vmatpush3.bf16.msra.mxu0 %v3505_v6  ;;  %v3514_v15 = vld [vmem:[#allocation10 + $0x18] sm:$0xff]   ;;  %v3518_v19 = vld [vmem:[#allocation10 + $0x20] sm:$0xff]   ;;  %v3521_v22 = vld [vmem:[#allocation8 + $0x28] sm:$0xff]   ;;  %p3746_p10 = scmp.ne.s32.totalorder %s4385_s27, %s3745_s19 }
  0x90   : > { %3123 = vmatpush3.bf16.msra.mxu1 %v3506_v7  ;;  %3084 = vmatprep.subr.bf16.mxu0 %v3507_v8  ;;  %v3522_v23 = vld [vmem:[#allocation10 + $0x28] sm:$0xff]   ;;  %v3523_v24 = vld [vmem:[#allocation8 + $0x70] sm:$0xff]   ;;  %v3527_v28 = vld [vmem:[#allocation8 + $0x78] sm:$0xff]  }
  0x91   : > { %3124 = vmatprep.subr.bf16.mxu1 %v3508_v9  ;;  %v3524_v25 = vld [vmem:[#allocation10 + $0x70] sm:$0xff]   ;;  %v3528_v29 = vld [vmem:[#allocation10 + $0x78] sm:$0xff]   ;;  %v380_v32 = vld [vmem:[%s4120_s24] sm:$0xff]  ;;  %p3747_p3 = pnand %p3746_p10, %p4065_p5 }
  0x92   : > { %v3525_v26 = vld [vmem:[#allocation8 + $0x30] sm:$0xff]   ;;  %v3529_v30 = vld [vmem:[#allocation8 + $0x38] sm:$0xff]   ;;  %v381_v33 = vld [vmem:[%s4120_s24 + $0x8] sm:$0xff]  ;;  %v636_v37 = vunpack.c.l.bf16 %v380_v32  ;;  %v637_v38 = vunpack.c.h.bf16 %v380_v32 }
  0x93   : > { %3085 = vmatpush3.bf16.msra.mxu0 %v3509_v10  ;;  %v3526_v27 = vld [vmem:[#allocation10 + $0x30] sm:$0xff]   ;;  %v3530_v31 = vld [vmem:[#allocation10 + $0x38] sm:$0xff]   ;;  %v2895_v36 = vcombine.high %v380_v32, %v381_v33  ;;  %v638_v39 = vunpack.c.l.bf16 %v381_v33  ;;  %v384_v40 = vld [vmem:[%s4120_s24 + $0x20] sm:$0xff]  ;;  %v639_v41 = vunpack.c.h.bf16 %v381_v33  ;;  %v2894_v52 = vcombine.low %v380_v32, %v381_v33  ;;  %p3748_p7 = pneg %p3747_p3 }
  0x94   : > { %3125 = vmatpush3.bf16.msra.mxu1 %v3510_v11  ;;  %3086 = vmatprep.subr.bf16.mxu0 %v3511_v12  ;;  %v382_v34 = vld [vmem:[%s4120_s24 + $0x10] sm:$0xff]  ;;  %v383_v35 = vld [vmem:[%s4120_s24 + $0x18] sm:$0xff]  ;;  %v385_v44 = vld [vmem:[%s4120_s24 + $0x28] sm:$0xff]  ;;  %v644_v50 = vunpack.c.l.bf16 %v384_v40  ;;  %v645_v55 = vunpack.c.h.bf16 %v384_v40 }
  0x95   : > { %3126 = vmatprep.subr.bf16.mxu1 %v3512_v13  ;;  %v640_v42 = vunpack.c.l.bf16 %v382_v34  ;;  %v641_v43 = vunpack.c.h.bf16 %v382_v34  ;;  %595 = vmatprep.mubr.bf16.mxu0 %v2895_v36  ;;  %v642_v45 = vunpack.c.l.bf16 %v383_v35  ;;  %v652_v46 = vadd.f32 %v638_v39, %v636_v37  ;;  %v386_v49 = vld [vmem:[%s4120_s24 + $0x30] sm:$0xff]  ;;  %v387_v54 = vld [vmem:[%s4120_s24 + $0x38] sm:$0xff]  ;;  %vm4142_vm3 = vmand %vm877_vm0, %vm878_vm1  ;;  %s3862_s24 = smov [#allocation13]  }
  0x96   : > { %v643_v47 = vunpack.c.h.bf16 %v383_v35  ;;  %v665_v48 = vadd.f32 %v639_v41, %v637_v38  ;;  %v2897_v56 = vcombine.high %v382_v34, %v383_v35  ;;  %v646_v58 = vunpack.c.l.bf16 %v385_v44  ;;  %v886_v32 = vld [vmem:[#allocation2 + $0x10] sm:$0x1]  ;;  %vm4151_vm4 = vmand %vm877_vm0, %vm910_vm2  ;;  %v915_v36 = vld [vmem:[#allocation2 + $0xc] sm:$0x1]  ;;  %s3749_s11 = sshll.u32 %s3862_s24, 4  ;;  %s3750_s11 = int_to_ptr.vmem [resolvable:$false] %s3749_s11 }
  0x97   : > { %3087 = vmatpush3.bf16.msra.mxu0 %v3513_v14  ;;  %v653_v51 = vadd.f32 %v652_v46, %v640_v42  ;;  %v647_v60 = vunpack.c.h.bf16 %v385_v44  ;;  %v648_v62 = vunpack.c.l.bf16 %v386_v49  ;;  %v649_v63 = vunpack.c.h.bf16 %v386_v49  ;;  %v918_v39 = vld [vmem:[#allocation2 + $0x14] sm:$0x1]  ;;  %v3540_v42 = vld [vmem:[#allocation11 + $0x40] sm:$0xff]   ;;  %vm4189_vm7 = vmor %vm1348_vm5, %vm1349_vm6  ;;  %s3751_s13 = scalar_lea.vmem %s3750_s11, 2048  ;;  %p3752_p12 = scmp.lt.s32.totalorder %s4385_s27, %s3750_s11 }
  0x98   : > { %3127 = vmatpush3.bf16.msra.mxu1 %v3514_v15  ;;  %3088 = vmatprep.subr.bf16.mxu0 %v3515_v16  ;;  %v666_v53 = vadd.f32 %v665_v48, %v641_v43  ;;  %v650_v1 = vunpack.c.l.bf16 %v387_v54  ;;  %v2896_v3 = vcombine.low %v382_v34, %v383_v35  ;;  %v651_v4 = vunpack.c.h.bf16 %v387_v54  ;;  %v889_v43 = vld [vmem:[#allocation2 + $0x18] sm:$0x1]  ;;  %v3542_v48 = vld [vmem:[#allocation11 + $0x88] sm:$0xff]   ;;  %vm4195_vm10 = vmor %vm1145_vm8, %vm1146_vm9  ;;  %p3753_p1 = scmp.lt.s32.totalorder %s3751_s13, %s3745_s19 }
  0x99   : > { %3128 = vmatprep.subr.bf16.mxu1 %v3516_v17  ;;  %v654_v57 = vadd.f32 %v653_v51, %v642_v45  ;;  %v2899_v6 = vcombine.high %v384_v40, %v385_v44  ;;  %v2898_v14 = vcombine.low %v384_v40, %v385_v44  ;;  %v2901_v16 = vcombine.high %v386_v49, %v387_v54  ;;  %v3539_v40 = vld [vmem:[#allocation11 + $0x80] sm:$0xff]   ;;  %v921_v44 = vld [vmem:[#allocation2 + $0x1c] sm:$0x1]  ;;  %vm4235_vm12 = vmand %vm1055_vm11, %vm910_vm2 }
  0x9a   : > { %v667_v59 = vadd.f32 %v666_v53, %v643_v47  ;;  %v887_v34 = vsel %vm4142_vm3, 0, %v886_v32  ;;  %v3861_v37 = vmov 0   ;;  %v916_v38 = vsel %vm4151_vm4, 0, %v915_v36  ;;  %v3541_v45 = vld [vmem:[#allocation11] sm:$0xff]   ;;  %p3754_p2 = por %p3753_p1, %p3752_p12 }
  0x9b   : > { %3089 = vmatpush3.bf16.msra.mxu0 %v3517_v18  ;;  %v655_v61 = vadd.f32 %v654_v57, %v644_v50  ;;  %872 = vst [vmem:[#allocation2] sm:$0xf] %v3861_v37  ;;  %873 = vst [vmem:[#allocation2 + $0x4] sm:$0x1] %v3861_v37  ;;  %v919_v41 = vsel %vm4151_vm4, 0, %v918_v39  ;;  %v890_v46 = vsel %vm4142_vm3, 0, %v889_v43 }
  0x9c   : > { %3129 = vmatpush3.bf16.msra.mxu1 %v3518_v19  ;;  %3090 = vmatprep.subr.bf16.mxu0 %v3519_v20  ;;  %v668_v0 = vadd.f32 %v667_v59, %v645_v55  ;;  %875 = vst [vmem:[#allocation2 + $0x48] sm:$0xf] %v3861_v37  ;;  %876 = vst [vmem:[#allocation2 + $0x4c] sm:$0x1] %v3861_v37  ;;  %v922_v47 = vsel %vm4151_vm4, 0, %v921_v44  ;;  %v3543_v57 = vld [vmem:[#allocation11 + $0x48] sm:$0xff]   ;;  %p3755_p4 = pnand %p3754_p2, %p3748_p7 }
  0x9d   : > { %3130 = vmatprep.subr.bf16.mxu1 %v3520_v21  ;;  %v656_v2 = vadd.f32 %v655_v61, %v646_v58  ;;  %888 = vst [vmem:[#allocation2 + $0x10] sm:$0x1] %v887_v34  ;;  %917 = vst [vmem:[#allocation2 + $0xc] sm:$0x1] %v916_v38  ;;  %v924_v50 = vld [vmem:[#allocation2 + $0x24] sm:$0x1] }
  0x9e   : > { %v669_v5 = vadd.f32 %v668_v0, %v647_v60  ;;  %920 = vst [vmem:[#allocation2 + $0x14] sm:$0x1] %v919_v41  ;;  %891 = vst [vmem:[#allocation2 + $0x18] sm:$0x1] %v890_v46  ;;  %v3544_v58 = vld [vmem:[#allocation11 + $0x8] sm:$0xff]   ;;  %v3545_v61 = vld [vmem:[#allocation11 + $0x90] sm:$0xff]  }
  0x9f   : > { %3091 = vmatpush3.bf16.msra.mxu0 %v3521_v22  ;;  %v657_v7 = vadd.f32 %v656_v2, %v648_v62  ;;  %923 = vst [vmem:[#allocation2 + $0x1c] sm:$0x1] %v922_v47  ;;  %v895_v59 = vld [vmem:[#allocation2 + $0x28] sm:$0x1]  ;;  %v927_v60 = vld [vmem:[#allocation2 + $0x2c] sm:$0x1] }
  0xa0   : > { %3131 = vmatpush3.bf16.msra.mxu1 %v3522_v23  ;;  %3092 = vmatprep.subr.bf16.mxu0 %v3523_v24  ;;  %v670_v8 = vadd.f32 %v669_v5, %v649_v63  ;;  %v2900_v24 = vcombine.low %v386_v49, %v387_v54  ;;  %v892_v49 = vld [vmem:[#allocation2 + $0x20] sm:$0x1]  ;;  %v925_v54 = vsel %vm4151_vm4, 0, %v924_v50  ;;  %v896_v62 = vsel %vm4142_vm3, 0, %v895_v59  ;;  %v3546_v0 = vld [vmem:[#allocation11 + $0x50] sm:$0xff]   ;;  %v4199_v50 = vld [vmem:[#allocation11 + $0x140] sm:$0xff]  }
  0xa1   : > { %3132 = vmatprep.subr.bf16.mxu1 %v3524_v25  ;;  %v658_v9 = vadd.f32 %v657_v7, %v650_v1  ;;  %v893_v53 = vsel %vm4142_vm3, 0, %v892_v49  ;;  %926 = vst [vmem:[#allocation2 + $0x24] sm:$0x1] %v925_v54  ;;  %v928_v63 = vsel %vm4151_vm4, 0, %v927_v60  ;;  %897 = vst [vmem:[#allocation2 + $0x28] sm:$0x1] %v896_v62 }
  0xa2   : > { %v671_v10 = vadd.f32 %v670_v8, %v651_v4  ;;  %v912_v51 = vld [vmem:[#allocation2 + $0x4] sm:$0x1]  ;;  %894 = vst [vmem:[#allocation2 + $0x20] sm:$0x1] %v893_v53  ;;  %929 = vst [vmem:[#allocation2 + $0x2c] sm:$0x1] %v928_v63 }
  0xa3   : > { %3093 = vmatpush3.bf16.msra.mxu0 %v3525_v26  ;;  %v659_v11 = vrot.slane %v658_v9, 4  ;;  %v913_v55 = vsel %vm4151_vm4, 0, %v912_v51  ;;  %v3547_v1 = vld [vmem:[#allocation11 + $0x10] sm:$0xff]   ;;  %v3548_v2 = vld [vmem:[#allocation11 + $0x98] sm:$0xff]   ;;  %v898_v4 = vld [vmem:[#allocation2 + $0x30] sm:$0x1] }
  0xa4   : > { %3133 = vmatpush3.bf16.msra.mxu1 %v3526_v27  ;;  %3094 = vmatprep.subr.bf16.mxu0 %v3527_v28  ;;  %v672_v12 = vrot.slane %v671_v10, 4  ;;  %914 = vst [vmem:[#allocation2 + $0x4] sm:$0x1] %v913_v55  ;;  %v899_v5 = vsel %vm4142_vm3, 0, %v898_v4  ;;  %v3558_v34 = vld [vmem:[#allocation11 + $0x70] sm:$0xff]   ;;  %v3561_v46 = vld [vmem:[#allocation11 + $0xb8] sm:$0xff]  }
  0xa5   : > { %3134 = vmatprep.subr.bf16.mxu1 %v3528_v29  ;;  %v660_v13 = vadd.f32 %v659_v11, %v658_v9  ;;  %900 = vst [vmem:[#allocation2 + $0x30] sm:$0x1] %v899_v5  ;;  %v3549_v9 = vld [vmem:[#allocation11 + $0x58] sm:$0xff]   ;;  %v933_v11 = vld [vmem:[#allocation2 + $0x3c] sm:$0x1] }
  0xa6   : > { %v673_v15 = vadd.f32 %v672_v12, %v671_v10  ;;  %v901_v10 = vld [vmem:[#allocation2 + $0x38] sm:$0x1]  ;;  %v3550_v12 = vld [vmem:[#allocation11 + $0x18] sm:$0xff]   ;;  %v907_v53 = vld [vmem:[#allocation2 + $0x48] sm:$0x1] }
  0xa7   : > { %3095 = vmatpush3.bf16.msra.mxu0 %v3529_v30  ;;  %v661_v17 = vrot.slane %v660_v13, 2  ;;  %v3559_v41 = vld [vmem:[#allocation11 + $0x30] sm:$0xff]   ;;  %v3563_v49 = vld [vmem:[#allocation11 + $0x38] sm:$0xff]   ;;  %v908_v54 = vsel %vm4142_vm3, 0, %v907_v53  ;;  %v1326_v55 = vld [vmem:[#allocation2 + $0x48] sm:$0xe] }
  0xa8   : > { %3135 = vmatpush3.bf16.msra.mxu1 %v3530_v31  ;;  %v674_v18 = vrot.slane %v673_v15, 2  ;;  %v883_v31 = vld [vmem:[#allocation2 + $0x8] sm:$0x1]  ;;  %3142 = vmatprep.subr.bf16.mxu0 %v3540_v42  ;;  %909 = vst [vmem:[#allocation2 + $0x48] sm:$0x1] %v908_v54 }
  0xa9   : > { %v662_v19 = vadd.f32 %v661_v17, %v660_v13  ;;  %v884_v33 = vsel %vm4142_vm3, 0, %v883_v31  ;;  %3298 = vmatprep.subr.bf16.mxu1 %v3539_v40  ;;  %v902_v13 = vsel %vm4142_vm3, 0, %v901_v10  ;;  %v936_v17 = vld [vmem:[#allocation2 + $0x44] sm:$0x1] }
  0xaa   : > { %596 = vmatmul.mubr.bf16.vlgmr.msra.gmra.mrb[0].mxu0 %v2894_v52  ;;  %v675_v20 = vadd.f32 %v674_v18, %v673_v15  ;;  %885 = vst [vmem:[#allocation2 + $0x8] sm:$0x1] %v884_v33  ;;  %v939_v52 = vld [vmem:[#allocation2 + $0x4c] sm:$0x1]  ;;  %903 = vst [vmem:[#allocation2 + $0x38] sm:$0x1] %v902_v13 }
  0xab   : > { %603 = vmatprep.mubr.bf16.mxu0 %v2897_v56  ;;  %v663_v21 = vrot.slane %v662_v19, 1  ;;  %3143 = vmatpush3.bf16.msra.mxu0 %v3541_v45  ;;  %v940_v56 = vsel %vm4151_vm4, 0, %v939_v52  ;;  %v3551_v15 = vld [vmem:[#allocation11 + $0xa0] sm:$0xff]   ;;  %v1126_v33 = vld [vmem:[#allocation2 + $0x4] sm:$0x1] }
  0xac   : > { %v676_v22 = vrot.slane %v675_v20, 1  ;;  %941 = vst [vmem:[#allocation2 + $0x4c] sm:$0x1] %v940_v56  ;;  %3144 = vmatprep.subr.bf16.mxu0 %v3543_v57  ;;  %v3552_v18 = vld [vmem:[#allocation11 + $0x60] sm:$0xff]   ;;  %v1158_v38 = vshll.u32 %v1126_v33, 16  ;;  %v3599_v45 = vld [vmem:[#allocation11 + $0xf8] sm:$0xff]  }
  0xad   : > { %v664_v23 = vadd.f32 %v663_v21, %v662_v19  ;;  %v3553_v21 = vld [vmem:[#allocation11 + $0x20] sm:$0xff]  }
  0xae   : > { %v677_v25 = vadd.f32 %v676_v22, %v675_v20  ;;  %v937_v20 = vsel %vm4151_vm4, 0, %v936_v17  ;;  %v3554_v22 = vld [vmem:[#allocation11 + $0xa8] sm:$0xff]   ;;  %v1160_v44 = vrot.slane %v1158_v38, 5  ;;  %v3568_v52 = vld [vmem:[#allocation11 + $0x100] sm:$0xff]  }
  0xaf   : > { %v678_v26 = vmul.f32 0.015625, %v664_v23  ;;  %3145 = vmatpush3.bf16.msra.mxu0 %v3544_v58  ;;  %938 = vst [vmem:[#allocation2 + $0x44] sm:$0x1] %v937_v20  ;;  %v3555_v23 = vld [vmem:[#allocation11 + $0x68] sm:$0xff]   ;;  %v1143_v57 = vld [vmem:[#allocation2 + $0x48] sm:$0xf] }
  0xb0   : > { %v679_v27 = vmul.f32 0.015625, %v677_v25  ;;  %3146 = vmatprep.subr.bf16.mxu0 %v3546_v0  ;;  %v1308_v25 = vld [vmem:[#allocation2] sm:$0xe]  ;;  %v2951_v58 = vrot.slane %v1326_v55, 9  ;;  %v1275_v60 = vshrl.u32 %v1143_v57, 16 }
  0xb1   : > { %v680_v28 = vpack.c.bf16 %v678_v26, %v678_v26  ;;  %v1309_v26 = vld [vmem:[#allocation2 + $0x4] sm:$0x1] }
  0xb2   : > { %604 = vmatmul.mubr.bf16.gmra.mrb[4].mxu0 %v2896_v3  ;;  %v681_v29 = vpack.c.bf16 %v679_v27, %v679_v27  ;;  %v880_v3 = vld [vmem:[#allocation2] sm:$0x1]  ;;  %v1353_v31 = vrot.slane %v1309_v26, 5  ;;  %v1277_v63 = vrot.slane %v1275_v60, 4  ;;  %v852_v26 = vlaneseq  ;;  %v3590_v27 = vld [vmem:[#allocation11 + $0x128] sm:$0xff]  }
  0xb3   : > { %611 = vmatprep.mubr.bf16.mxu0 %v2899_v6  ;;  %v930_v6 = vld [vmem:[#allocation2 + $0x34] sm:$0x1]  ;;  %v881_v7 = vsel %vm4142_vm3, 0, %v880_v3  ;;  %3147 = vmatpush3.bf16.msra.mxu0 %v3547_v1  ;;  %v1327_v56 = vld [vmem:[#allocation2 + $0x4c] sm:$0x1] }
  0xb4   : > { %843 = vmatprep.mubr.bf16.mxu1 %v681_v29  ;;  %v931_v8 = vsel %vm4151_vm4, 0, %v930_v6  ;;  %882 = vst [vmem:[#allocation2] sm:$0x1] %v881_v7  ;;  %3148 = vmatprep.subr.bf16.mxu0 %v3549_v9  ;;  %v3556_v29 = vld [vmem:[#allocation11 + $0x28] sm:$0xff]   ;;  %v1389_v59 = vrot.slane %v1327_v56, 5 }
  0xb5   : > { %844 = vmatmul.mubr.bf16.vlgmr.msra.gmra.mrb[0].mxu1 %v680_v28  ;;  %932 = vst [vmem:[#allocation2 + $0x34] sm:$0x1] %v931_v8  ;;  %v2942_v28 = vrot.slane %v1308_v25, 9  ;;  %v1144_v1 = vld [vmem:[#allocation2 + $0x4c] sm:$0x1] }
  0xb6   : > { %3299 = vmatpush3.bf16.msra.mxu1 %v3539_v40  ;;  %v1390_v62 = vsel %vm4189_vm7, %v2951_v58, %v1389_v59  ;;  %v1284_v3 = vshll.u32 %v1144_v1, 16  ;;  %v1114_v6 = vld [vmem:[#allocation2 + $0x48] sm:$0xf] }
  0xb7   : > { %3300 = vmatprep.subr.bf16.mxu1 %v3542_v48  ;;  %3149 = vmatpush3.bf16.msra.mxu0 %v3550_v12  ;;  %v1354_v37 = vsel %vm4189_vm7, %v2942_v28, %v1353_v31  ;;  %1410 = vst [vmem:[#allocation3 + $0x74] sm:$0xf] %v1390_v62  ;;  %1124 = vst [vmem:[#allocation3 + $0x6c] sm:$0xf] %v1114_v6  ;;  %v2893_v31 = vld [vmem:[%s4485_s2] ss:$0 sm:$0xff] }
  0xb8   : > { %3150 = vmatprep.subr.bf16.mxu0 %v3552_v18  ;;  %1401 = vst [vmem:[#allocation3 + $0x8] sm:$0xf] %v1354_v37  ;;  %v1286_v5 = vrot.slane %v1284_v3, 5 }
  0xba   : > { %612 = vmatmul.mubr.bf16.gmra.mrb[8].mxu0 %v2898_v14  ;;  %3301 = vmatpush3.bf16.msra.mxu1 %v3542_v48  ;;  %v934_v14 = vsel %vm4151_vm4, 0, %v933_v11  ;;  %v3562_v48 = vld [vmem:[#allocation11 + $0x78] sm:$0xff]  }
  0xbb   : > { %619 = vmatprep.mubr.bf16.mxu0 %v2901_v16  ;;  %3302 = vmatprep.subr.bf16.mxu1 %v3545_v61  ;;  %935 = vst [vmem:[#allocation2 + $0x3c] sm:$0x1] %v934_v14  ;;  %v904_v16 = vld [vmem:[#allocation2 + $0x40] sm:$0x1] }
  0xbc   : > { %v905_v19 = vsel %vm4142_vm3, 0, %v904_v16  ;;  %3151 = vmatpush3.bf16.msra.mxu0 %v3553_v21  ;;  %v1125_v32 = vld [vmem:[#allocation2] sm:$0xf] }
  0xbd   : > { %906 = vst [vmem:[#allocation2 + $0x40] sm:$0x1] %v905_v19  ;;  %3152 = vmatprep.subr.bf16.mxu0 %v3555_v23  ;;  %v1149_v35 = vshrl.u32 %v1125_v32, 16  ;;  %v1152_v36 = vshll.u32 %v1125_v32, 16  ;;  %v1105_v42 = vld [vmem:[#allocation2] sm:$0xf] }
  0xbe   : > { %3303 = vmatpush3.bf16.msra.mxu1 %v3545_v61  ;;  %1115 = vst [vmem:[#allocation3] sm:$0xf] %v1105_v42  ;;  %v1278_v61 = vshll.u32 %v1143_v57, 16 }
  0xbf   : > { %3304 = vmatprep.subr.bf16.mxu1 %v3548_v2  ;;  %v1151_v39 = vrot.slane %v1149_v35, 4  ;;  %v1154_v40 = vrot.slane %v1152_v36, 5  ;;  %v853_v36 = vshrl.u32 %v852_v26, 7 }
  0xc0   : > { %3153 = vmatpush3.bf16.msra.mxu0 %v3556_v29  ;;  %v1280_v0 = vrot.slane %v1278_v61, 5 }
  0xc1   : > { %3154 = vmatprep.subr.bf16.mxu0 %v3558_v34  ;;  %v1155_v43 = vor.u32 %v1154_v40, %v1151_v39  ;;  %v714_v39 = vld [vmem:[%s4487_s4] sm:$0x1]  ;;  %v854_v54 = vsub.s32 0, %v853_v36 }
  0xc2   : > { %620 = vmatmul.mubr.bf16.gmra.mrb[12].mxu0 %v2900_v24  ;;  %3305 = vmatpush3.bf16.msra.mxu1 %v3548_v2  ;;  %v3557_v24 = vld [vmem:[#allocation11 + $0xb0] sm:$0xff]   ;;  %v1281_v2 = vor.u32 %v1280_v0, %v1277_v63 }
  0xc3   : > { %3306 = vmatprep.subr.bf16.mxu1 %v3551_v15  ;;  %v1156_v47 = vrot.slane %v1155_v43, 4 }
  0xc4   : > { %3155 = vmatpush3.bf16.msra.mxu0 %v3559_v41  ;;  %v1282_v4 = vrot.slane %v1281_v2, 4 }
  0xc5   : > { %v1161_v51 = vsel %vm4195_vm10, %v1156_v47, %v1160_v44  ;;  %3156 = vmatprep.subr.bf16.mxu0 %v3562_v48 }
  0xc6   : > { %3307 = vmatpush3.bf16.msra.mxu1 %v3551_v15  ;;  %1298 = vst [vmem:[#allocation3 + $0x4] sm:$0xf] %v1161_v51  ;;  %v1287_v7 = vsel %vm4195_vm10, %v1282_v4, %v1286_v5 }
  0xc7   : > { %3308 = vmatprep.subr.bf16.mxu1 %v3554_v22  ;;  %1307 = vst [vmem:[#allocation3 + $0x70] sm:$0xf] %v1287_v7 }
  0xc8   : > { %3157 = vmatpush3.bf16.msra.mxu0 %v3563_v49 }
  0xc9   : > { %3194 = vmatprep.subr.bf16.mxu0 %v3568_v52 }
  0xca   : > { %3309 = vmatpush3.bf16.msra.mxu1 %v3554_v22 }
  0xcb   : > { %3310 = vmatprep.subr.bf16.mxu1 %v3557_v24 }
  0xce   : > { %3311 = vmatpush3.bf16.msra.mxu1 %v3557_v24 }
  0xcf   : > { %3312 = vmatprep.subr.bf16.mxu1 %v3561_v46 }
  0xd2   : > { %3313 = vmatpush3.bf16.msra.mxu1 %v3561_v46 }
  0xd3   : > { %3322 = vmatprep.subr.bf16.mxu1 %v4199_v50 }
 0x17d   : > { %v3096_v8 = vpop.f32.mrb[0].mxu0 }
 0x17e   : > { %v3097_v9 = vpop.f32.mrb[1].mxu0 }
 0x17f   : > { %v3098_v10 = vadd.f32 %v3097_v9, %v3096_v8  ;;  %v3099_v11 = vpop.f32.mrb[2].mxu0 }
 0x180   : > { %v3100_v12 = vpop.f32.mrb[3].mxu0 }
 0x181   : > { %v3101_v13 = vadd.f32 %v3100_v12, %v3099_v11  ;;  %v598_v38 = vadd.f32 %v3098_v10, %v2893_v31 }
 0x183   : > { %v601_v43 = vadd.f32 %v3101_v13, %v2893_v31  ;;  %v628_v55 = vmax.f32 %v598_v38, 0.0 }
 0x185   : > { %v3102_v14 = vpop.f32.mrb[4].mxu0  ;;  %v629_v57 = vmax.f32 %v601_v43, 0.0 }
 0x186   : > { %v3103_v15 = vpop.f32.mrb[5].mxu0 }
 0x187   : > { %v3104_v16 = vadd.f32 %v3103_v15, %v3102_v14  ;;  %v3105_v17 = vpop.f32.mrb[6].mxu0 }
 0x188   : > { %v3106_v18 = vpop.f32.mrb[7].mxu0  ;;  %v3136_v35 = vpop.f32.mrb[0].mxu1 }
 0x189   : > { %v3107_v19 = vadd.f32 %v3106_v18, %v3105_v17  ;;  %v3137_v40 = vpop.f32.mrb[1].mxu1  ;;  %v606_v44 = vadd.f32 %v3104_v16, %v2893_v31 }
 0x18a   : > { %v3138_v41 = vadd.f32 %v3137_v40, %v3136_v35  ;;  %v3139_v42 = vpop.f32.mrb[2].mxu1 }
 0x18b   : > { %v609_v46 = vadd.f32 %v3107_v19, %v2893_v31  ;;  %v3140_v47 = vpop.f32.mrb[3].mxu1  ;;  %v630_v58 = vmax.f32 %v606_v44, 0.0 }
 0x18c   : > { %v846_v53 = vadd.f32 %v3138_v41, %v714_v39  ;;  %v1078_v47 = vld [vmem:[#allocation2 + $0x24] sm:$0x1] }
 0x18d   : > { %v3108_v20 = vpop.f32.mrb[8].mxu0  ;;  %v631_v59 = vmax.f32 %v609_v46, 0.0  ;;  %v1075_v46 = vld [vmem:[#allocation2 + $0x20] sm:$0xf] }
 0x18e   : > { %v3109_v21 = vpop.f32.mrb[9].mxu0  ;;  %v851_v56 = vmax.f32 %v846_v53, 0.0 }
 0x18f   : > { %v3110_v22 = vadd.f32 %v3109_v21, %v3108_v20  ;;  %v3111_v23 = vpop.f32.mrb[10].mxu0  ;;  %v1057_v21 = vld [vmem:[#allocation2 + $0x8] sm:$0xf] }
 0x190   : > { %v3112_v24 = vpop.f32.mrb[11].mxu0  ;;  %v855_v0 = vrot.slane %v851_v56, %v854_v54 }
 0x191   : > { %v3113_v25 = vadd.f32 %v3112_v24, %v3111_v23  ;;  %v614_v48 = vadd.f32 %v3110_v22, %v2893_v31  ;;  %v1063_v22 = vld [vmem:[#allocation2 + $0x10] sm:$0xf]  ;;  %v1066_v23 = vld [vmem:[#allocation2 + $0x14] sm:$0x1] }
 0x192   : > { %v856_v1 = vadd.f32 %v855_v0, %v628_v55  ;;  %v857_v2 = vadd.f32 %v855_v0, %v629_v57  ;;  %v858_v3 = vadd.f32 %v855_v0, %v630_v58  ;;  %v859_v4 = vadd.f32 %v855_v0, %v631_v59  ;;  %v1060_v57 = vld [vmem:[#allocation2 + $0xc] sm:$0x1] }
 0x193   : > { %v617_v49 = vadd.f32 %v3113_v25, %v2893_v31  ;;  %v632_v60 = vmax.f32 %v614_v48, 0.0 }
 0x194   : > { %v3070_v9 = vpack.c.bf16 %v856_v1, %v856_v1  ;;  %865 = vst [vmem:[%s4217_s15 + $0x8] sm:$0xff] %v857_v2  ;;  %v3071_v10 = vpack.c.bf16 %v857_v2, %v857_v2  ;;  %864 = vst [vmem:[%s4217_s15] sm:$0xff] %v856_v1  ;;  %v3072_v11 = vpack.c.bf16 %v858_v3, %v858_v3 }
 0x195   : > { %v3114_v28 = vpop.f32.mrb[12].mxu0  ;;  %v633_v61 = vmax.f32 %v617_v49, 0.0  ;;  %v860_v5 = vadd.f32 %v855_v0, %v632_v60  ;;  %866 = vst [vmem:[%s4217_s15 + $0x10] sm:$0xff] %v858_v3  ;;  %867 = vst [vmem:[%s4217_s15 + $0x18] sm:$0xff] %v859_v4  ;;  %v3073_v12 = vpack.c.bf16 %v859_v4, %v859_v4  ;;  %v1087_v4 = vld [vmem:[#allocation2 + $0x30] sm:$0xf] }
 0x196   : > { %v3115_v29 = vpop.f32.mrb[13].mxu0  ;;  %v975_v17 = vshrl.u32 %v3070_v9, 16  ;;  %v978_v18 = vshll.u32 %v3070_v9, 16  ;;  %v983_v19 = vshrl.u32 %v3071_v10, 16  ;;  %v986_v20 = vshll.u32 %v3071_v10, 16 }
 0x197   : > { %v3116_v32 = vadd.f32 %v3115_v29, %v3114_v28  ;;  %v3117_v33 = vpop.f32.mrb[14].mxu0  ;;  %v861_v6 = vadd.f32 %v855_v0, %v633_v61  ;;  %868 = vst [vmem:[%s4217_s15 + $0x20] sm:$0xff] %v860_v5  ;;  %v3074_v13 = vpack.c.bf16 %v860_v5, %v860_v5  ;;  %v991_v24 = vshrl.u32 %v3072_v11, 16  ;;  %v1090_v5 = vld [vmem:[#allocation2 + $0x34] sm:$0x1] }
 0x198   : > { %v3118_v34 = vpop.f32.mrb[15].mxu0  ;;  %v994_v25 = vshll.u32 %v3072_v11, 16  ;;  %v999_v26 = vshrl.u32 %v3073_v12, 16  ;;  %v1002_v28 = vshll.u32 %v3073_v12, 16  ;;  %v977_v29 = vrot.slane %v975_v17, 7 }
 0x199   : > { %v3119_v37 = vadd.f32 %v3118_v34, %v3117_v33  ;;  %v622_v51 = vadd.f32 %v3116_v32, %v2893_v31  ;;  %869 = vst [vmem:[%s4217_s15 + $0x28] sm:$0xff] %v861_v6  ;;  %v4225_v14 = vpack.c.bf16 %v861_v6, %v861_v6  ;;  %v1069_v32 = vld [vmem:[#allocation2 + $0x18] sm:$0xf]  ;;  %v1007_v33 = vshrl.u32 %v3074_v13, 16 }
 0x19a   : > { %v1010_v34 = vshll.u32 %v3074_v13, 16  ;;  %v993_v36 = vrot.slane %v991_v24, 7  ;;  %v1001_v38 = vrot.slane %v999_v26, 7  ;;  %v980_v41 = vor.u32 %v978_v18, %v977_v29 }
 0x19b   : > { %v625_v52 = vadd.f32 %v3119_v37, %v2893_v31  ;;  %v634_v62 = vmax.f32 %v622_v51, 0.0  ;;  %v985_v31 = vrot.slane %v983_v19, 7  ;;  %v1072_v37 = vld [vmem:[#allocation2 + $0x1c] sm:$0x1]  ;;  %v1015_v39 = vshrl.u32 %v4225_v14, 16 }
 0x19c   : > { %v1018_v40 = vshll.u32 %v4225_v14, 16  ;;  %v981_v42 = vrot.slane %v977_v29, 4  ;;  %v996_v48 = vor.u32 %v994_v25, %v993_v36  ;;  %v997_v49 = vrot.slane %v993_v36, 4  ;;  %v1093_v14 = vld [vmem:[#allocation2 + $0x38] sm:$0xf] }
 0x19d   : > { %v635_v63 = vmax.f32 %v625_v52, 0.0  ;;  %v862_v7 = vadd.f32 %v855_v0, %v634_v62  ;;  %v988_v43 = vor.u32 %v986_v20, %v985_v31  ;;  %v989_v44 = vrot.slane %v985_v31, 4  ;;  %v1081_v62 = vld [vmem:[#allocation2 + $0x28] sm:$0xf] }
 0x19e   : > { %v1004_v51 = vor.u32 %v1002_v28, %v1001_v38  ;;  %v1005_v52 = vrot.slane %v1001_v38, 4  ;;  %v1058_v53 = vsel %vm4235_vm12, %v980_v41, %v1057_v21  ;;  %v1009_v56 = vrot.slane %v1007_v33, 7  ;;  %v1096_v21 = vld [vmem:[#allocation2 + $0x3c] sm:$0x1] }
 0x19f   : > { %v863_v8 = vadd.f32 %v855_v0, %v635_v63  ;;  %870 = vst [vmem:[%s4217_s15 + $0x30] sm:$0xff] %v862_v7  ;;  %v4228_v15 = vpack.c.bf16 %v862_v7, %v862_v7  ;;  %v1064_v54 = vsel %vm4235_vm12, %v988_v43, %v1063_v22  ;;  %v1067_v55 = vsel %vm4142_vm3, %v989_v44, %v1066_v23  ;;  %v1084_v63 = vld [vmem:[#allocation2 + $0x2c] sm:$0x1]  ;;  %v1099_v22 = vld [vmem:[#allocation2 + $0x40] sm:$0xf] }
 0x1a0   : > { %1059 = vst [vmem:[#allocation2 + $0x8] sm:$0xf] %v1058_v53  ;;  %1065 = vst [vmem:[#allocation2 + $0x10] sm:$0xf] %v1064_v54  ;;  %v1070_v58 = vsel %vm4235_vm12, %v996_v48, %v1069_v32  ;;  %v1073_v59 = vsel %vm4142_vm3, %v997_v49, %v1072_v37  ;;  %v1076_v60 = vsel %vm4235_vm12, %v1004_v51, %v1075_v46  ;;  %v1013_v1 = vrot.slane %v1009_v56, 4 }
 0x1a1   : > { %871 = vst [vmem:[%s4217_s15 + $0x38] sm:$0xff] %v863_v8  ;;  %v4231_v16 = vpack.c.bf16 %v863_v8, %v863_v8  ;;  %1068 = vst [vmem:[#allocation2 + $0x14] sm:$0x1] %v1067_v55  ;;  %v1079_v61 = vsel %vm4142_vm3, %v1005_v52, %v1078_v47  ;;  %v1012_v0 = vor.u32 %v1010_v34, %v1009_v56  ;;  %v1017_v2 = vrot.slane %v1015_v39, 7  ;;  %v1102_v23 = vld [vmem:[#allocation2 + $0x44] sm:$0x1] }
 0x1a2   : > { %1071 = vst [vmem:[#allocation2 + $0x18] sm:$0xf] %v1070_v58  ;;  %1074 = vst [vmem:[#allocation2 + $0x1c] sm:$0x1] %v1073_v59  ;;  %v1023_v3 = vshrl.u32 %v4228_v15, 16  ;;  %v1061_v7 = vsel %vm4142_vm3, %v981_v42, %v1060_v57  ;;  %v1085_v9 = vsel %vm4142_vm3, %v1013_v1, %v1084_v63  ;;  %v1026_v13 = vshll.u32 %v4228_v15, 16 }
 0x1a3   : > { %1077 = vst [vmem:[#allocation2 + $0x20] sm:$0xf] %v1076_v60  ;;  %1080 = vst [vmem:[#allocation2 + $0x24] sm:$0x1] %v1079_v61  ;;  %v1031_v6 = vshrl.u32 %v4231_v16, 16  ;;  %v1082_v8 = vsel %vm4235_vm12, %v1012_v0, %v1081_v62  ;;  %v1020_v10 = vor.u32 %v1018_v40, %v1017_v2  ;;  %v1021_v11 = vrot.slane %v1017_v2, 4 }
 0x1a4   : > { %1062 = vst [vmem:[#allocation2 + $0xc] sm:$0x1] %v1061_v7  ;;  %1083 = vst [vmem:[#allocation2 + $0x28] sm:$0xf] %v1082_v8  ;;  %v1025_v12 = vrot.slane %v1023_v3, 7  ;;  %v1034_v18 = vshll.u32 %v4231_v16, 16 }
 0x1a5   : > { %1086 = vst [vmem:[#allocation2 + $0x2c] sm:$0x1] %v1085_v9  ;;  %v1033_v17 = vrot.slane %v1031_v6, 7  ;;  %v1088_v19 = vsel %vm4235_vm12, %v1020_v10, %v1087_v4  ;;  %v1091_v20 = vsel %vm4142_vm3, %v1021_v11, %v1090_v5 }
 0x1a6   : > { %1089 = vst [vmem:[#allocation2 + $0x30] sm:$0xf] %v1088_v19  ;;  %1092 = vst [vmem:[#allocation2 + $0x34] sm:$0x1] %v1091_v20  ;;  %v1028_v24 = vor.u32 %v1026_v13, %v1025_v12  ;;  %v1029_v25 = vrot.slane %v1025_v12, 4 }
 0x1a7   : > { %v1036_v26 = vor.u32 %v1034_v18, %v1033_v17  ;;  %v1037_v28 = vrot.slane %v1033_v17, 4  ;;  %v1310_v15 = vld [vmem:[#allocation2 + $0x8] sm:$0xe]  ;;  %v1312_v36 = vld [vmem:[#allocation2 + $0x10] sm:$0xe] }
 0x1a8   : > { %v1106_v29 = vld [vmem:[#allocation2 + $0x8] sm:$0xf]  ;;  %v1094_v16 = vsel %vm4235_vm12, %v1028_v24, %v1093_v14  ;;  %v1097_v32 = vsel %vm4142_vm3, %v1029_v25, %v1096_v21  ;;  %v1313_v37 = vld [vmem:[#allocation2 + $0x14] sm:$0x1]  ;;  %v2943_v39 = vrot.slane %v1310_v15, 9  ;;  %v2944_v43 = vrot.slane %v1312_v36, 9 }
 0x1a9   : > { %v1127_v31 = vld [vmem:[#allocation2 + $0x8] sm:$0xf]  ;;  %v1100_v33 = vsel %vm4235_vm12, %v1036_v26, %v1099_v22  ;;  %v1103_v34 = vsel %vm4142_vm3, %v1037_v28, %v1102_v23  ;;  %1116 = vst [vmem:[#allocation3 + $0xc] sm:$0xf] %v1106_v29  ;;  %v1314_v38 = vld [vmem:[#allocation2 + $0x18] sm:$0xe] }
 0x1aa   : > { %1095 = vst [vmem:[#allocation2 + $0x38] sm:$0xf] %v1094_v16  ;;  %1098 = vst [vmem:[#allocation2 + $0x3c] sm:$0x1] %v1097_v32  ;;  %v1163_v40 = vshrl.u32 %v1127_v31, 16  ;;  %v1166_v41 = vshll.u32 %v1127_v31, 16 }
 0x1ab   : > { %1101 = vst [vmem:[#allocation2 + $0x40] sm:$0xf] %v1100_v33  ;;  %1104 = vst [vmem:[#allocation2 + $0x44] sm:$0x1] %v1103_v34  ;;  %v1315_v42 = vld [vmem:[#allocation2 + $0x1c] sm:$0x1] }
 0x1ac   : > { %v1311_v44 = vld [vmem:[#allocation2 + $0xc] sm:$0x1]  ;;  %v1361_v35 = vrot.slane %v1313_v37, 5  ;;  %v2945_v47 = vrot.slane %v1314_v38, 9  ;;  %v1165_v30 = vrot.slane %v1163_v40, 4  ;;  %v1168_v49 = vrot.slane %v1166_v41, 5 }
 0x1ad   : > { %v1128_v46 = vld [vmem:[#allocation2 + $0xc] sm:$0x1]  ;;  %v1357_v48 = vrot.slane %v1311_v44, 5  ;;  %v1107_v52 = vld [vmem:[#allocation2 + $0x10] sm:$0xf]  ;;  %v1365_v54 = vrot.slane %v1315_v42, 5 }
 0x1ae   : > { %v1172_v51 = vshll.u32 %v1128_v46, 16  ;;  %v1362_v53 = vsel %vm4189_vm7, %v2944_v43, %v1361_v35  ;;  %v1108_v55 = vld [vmem:[#allocation2 + $0x18] sm:$0xf]  ;;  %1117 = vst [vmem:[#allocation3 + $0x18] sm:$0xf] %v1107_v52  ;;  %v1169_v58 = vor.u32 %v1168_v49, %v1165_v30  ;;  %v3570_v31 = vld [vmem:[#allocation11 + $0x148] sm:$0xff]  }
 0x1af   : > { %v1129_v56 = vld [vmem:[#allocation2 + $0x10] sm:$0xf]  ;;  %v1358_v57 = vsel %vm4189_vm7, %v2943_v39, %v1357_v48  ;;  %1403 = vst [vmem:[#allocation3 + $0x20] sm:$0xf] %v1362_v53  ;;  %1118 = vst [vmem:[#allocation3 + $0x24] sm:$0xf] %v1108_v55  ;;  %v1366_v63 = vsel %vm4189_vm7, %v2945_v47, %v1365_v54 }
 0x1b0   : > { %v1174_v59 = vrot.slane %v1172_v51, 5  ;;  %v1130_v60 = vld [vmem:[#allocation2 + $0x14] sm:$0x1]  ;;  %v1131_v61 = vld [vmem:[#allocation2 + $0x18] sm:$0xf]  ;;  %v1177_v62 = vshrl.u32 %v1129_v56, 16 }
 0x1b1   : > { %1402 = vst [vmem:[#allocation3 + $0x14] sm:$0xf] %v1358_v57  ;;  %v1132_v0 = vld [vmem:[#allocation2 + $0x1c] sm:$0x1]  ;;  %v1180_v1 = vshll.u32 %v1129_v56, 16  ;;  %v1186_v2 = vshll.u32 %v1130_v60, 16 }
 0x1b2   : > { %v1191_v3 = vshrl.u32 %v1131_v61, 16  ;;  %v1170_v4 = vrot.slane %v1169_v58, 4  ;;  %1404 = vst [vmem:[#allocation3 + $0x2c] sm:$0xf] %v1366_v63  ;;  %v1179_v5 = vrot.slane %v1177_v62, 4  ;;  %v1194_v6 = vshll.u32 %v1131_v61, 16 }
 0x1b3   : > { %v1200_v7 = vshll.u32 %v1132_v0, 16  ;;  %v1316_v8 = vld [vmem:[#allocation2 + $0x20] sm:$0xe]  ;;  %v1182_v9 = vrot.slane %v1180_v1, 5  ;;  %v1188_v10 = vrot.slane %v1186_v2, 5  ;;  %v1411_v43 = vld [vmem:[#allocation3] sm:$0xff] }
 0x1b4   : > { %v1193_v11 = vrot.slane %v1191_v3, 4  ;;  %v1317_v12 = vld [vmem:[#allocation2 + $0x24] sm:$0x1]  ;;  %v2946_v13 = vrot.slane %v1316_v8, 9  ;;  %v1175_v14 = vsel %vm4195_vm10, %v1170_v4, %v1174_v59  ;;  %v1196_v17 = vrot.slane %v1194_v6, 5  ;;  %v3569_v30 = vld [vmem:[#allocation11 + $0xc0] sm:$0xff]  }
 0x1b5   : > { %v1202_v18 = vrot.slane %v1200_v7, 5  ;;  %v1318_v19 = vld [vmem:[#allocation2 + $0x28] sm:$0xe]  ;;  %v1319_v20 = vld [vmem:[#allocation2 + $0x2c] sm:$0x1]  ;;  %v1183_v21 = vor.u32 %v1182_v9, %v1179_v5  ;;  %v1369_v22 = vrot.slane %v1317_v12, 5 }
 0x1b6   : > { %1299 = vst [vmem:[#allocation3 + $0x10] sm:$0xf] %v1175_v14  ;;  %v2947_v23 = vrot.slane %v1318_v19, 9  ;;  %v1373_v24 = vrot.slane %v1319_v20, 5  ;;  %v1109_v25 = vld [vmem:[#allocation2 + $0x20] sm:$0xf]  ;;  %v1197_v26 = vor.u32 %v1196_v17, %v1193_v11 }
 0x1b7   : > { %v1110_v28 = vld [vmem:[#allocation2 + $0x28] sm:$0xf]  ;;  %1119 = vst [vmem:[#allocation3 + $0x30] sm:$0xf] %v1109_v25  ;;  %v1133_v15 = vld [vmem:[#allocation2 + $0x20] sm:$0xf]  ;;  %v1370_v32 = vsel %vm4189_vm7, %v2946_v13, %v1369_v22 }
 0x1b8   : > { %v1134_v29 = vld [vmem:[#allocation2 + $0x24] sm:$0x1]  ;;  %v1184_v16 = vrot.slane %v1183_v21, 4  ;;  %v1374_v33 = vsel %vm4189_vm7, %v2947_v23, %v1373_v24  ;;  %1120 = vst [vmem:[#allocation3 + $0x3c] sm:$0xf] %v1110_v28  ;;  %v1205_v36 = vshrl.u32 %v1133_v15, 16 }
 0x1b9   : > { %v1135_v34 = vld [vmem:[#allocation2 + $0x28] sm:$0xf]  ;;  %v3560_v37 = vld [vmem:[#allocation3 + $0x8] ss:$12 sps:$4 sm:$0xff]   ;;  %v1198_v38 = vrot.slane %v1197_v26, 4  ;;  %v1208_v39 = vshll.u32 %v1133_v15, 16 }
 0x1ba   : > { %1405 = vst [vmem:[#allocation3 + $0x38] sm:$0xf] %v1370_v32  ;;  %1406 = vst [vmem:[#allocation3 + $0x44] sm:$0xf] %v1374_v33  ;;  %v3567_v40 = vld [vmem:[#allocation3 + $0x20] ss:$12 sps:$4 sm:$0xff]   ;;  %v1189_v41 = vsel %vm4195_vm10, %v1184_v16, %v1188_v10  ;;  %3314 = vmatprep.mubr.bf16.mxu1 %v3560_v37 }
 0x1bb   : > { %v1136_v42 = vld [vmem:[#allocation2 + $0x2c] sm:$0x1]  ;;  %v1203_v44 = vsel %vm4195_vm10, %v1198_v38, %v1202_v18  ;;  %1300 = vst [vmem:[#allocation3 + $0x1c] sm:$0xf] %v1189_v41  ;;  %v1207_v46 = vrot.slane %v1205_v36, 4  ;;  %v1210_v35 = vrot.slane %v1208_v39, 5  ;;  %3315 = vmatmul.mubr.bf16.vlgmr.msra.gmra.mrb[4].mxu1 %v3567_v40 }
 0x1bc   : > { %v1214_v47 = vshll.u32 %v1134_v29, 16  ;;  %v1320_v48 = vld [vmem:[#allocation2 + $0x30] sm:$0xe]  ;;  %1301 = vst [vmem:[#allocation3 + $0x28] sm:$0xf] %v1203_v44  ;;  %v3574_v49 = vld [vmem:[#allocation11 + $0x150] sm:$0xff]   ;;  %3323 = vmatpush3.bf16.msra.mxu1 %v4199_v50 }
 0x1bd   : > { %v1219_v51 = vshrl.u32 %v1135_v34, 16  ;;  %v1222_v52 = vshll.u32 %v1135_v34, 16  ;;  %v1228_v53 = vshll.u32 %v1136_v42, 16  ;;  %v1321_v54 = vld [vmem:[#allocation2 + $0x34] sm:$0x1]  ;;  %v4293_v55 = vld [vmem:[#allocation3 + $0xc] sm:$0xff]  ;;  %v1211_v56 = vor.u32 %v1210_v35, %v1207_v46  ;;  %3324 = vmatprep.subr.bf16.mxu1 %v3570_v31 }
 0x1be   : > { %v1322_v57 = vld [vmem:[#allocation2 + $0x38] sm:$0xe]  ;;  %v1323_v58 = vld [vmem:[#allocation2 + $0x3c] sm:$0x1]  ;;  %v2948_v59 = vrot.slane %v1320_v48, 9  ;;  %v2952_v60 = vcombine.low %v1411_v43, %v4293_v55  ;;  %v2953_v61 = vcombine.high %v1411_v43, %v4293_v55  ;;  %v3571_v0 = vld [vmem:[#allocation11 + $0x108] sm:$0xff]  }
 0x1bf   : > { %v1221_v62 = vrot.slane %v1219_v51, 4  ;;  %v1224_v63 = vrot.slane %v1222_v52, 5  ;;  %v1212_v1 = vrot.slane %v1211_v56, 4  ;;  %v1216_v2 = vrot.slane %v1214_v47, 5  ;;  %v3572_v5 = vld [vmem:[#allocation11 + $0xc8] sm:$0xff]   ;;  %v3576_v7 = vld [vmem:[#allocation11 + $0x110] sm:$0xff]  }
 0x1c0   : > { %v1377_v3 = vrot.slane %v1321_v54, 5  ;;  %v2949_v4 = vrot.slane %v1322_v57, 9  ;;  %1715 = vmatprep.mubr.bf16.mxu0 %v2953_v61  ;;  %3325 = vmatpush3.bf16.msra.mxu1 %v3570_v31  ;;  %v3579_v8 = vld [vmem:[#allocation11 + $0x158] sm:$0xff]   ;;  %v1230_v10 = vrot.slane %v1228_v53, 5  ;;  %v1381_v12 = vrot.slane %v1323_v58, 5  ;;  %v3578_v29 = vld [vmem:[#allocation11 + $0xd0] sm:$0xff]  }
 0x1c1   : > { %v3575_v6 = vld [vmem:[#allocation3 + $0x38] ss:$12 sps:$4 sm:$0xff]   ;;  %v1225_v50 = vor.u32 %v1224_v63, %v1221_v62  ;;  %1716 = vmatmul.mubr.bf16.vlgmr.msra.gmra.mrb[16].mxu0 %v2952_v60  ;;  %v1217_v9 = vsel %vm4195_vm10, %v1212_v1, %v1216_v2  ;;  %v1111_v13 = vld [vmem:[#allocation2 + $0x30] sm:$0xf]  ;;  %v1112_v14 = vld [vmem:[#allocation2 + $0x38] sm:$0xf]  ;;  %3326 = vmatprep.subr.bf16.mxu1 %v3574_v49 }
 0x1c2   : > { %v1378_v11 = vsel %vm4189_vm7, %v2948_v59, %v1377_v3  ;;  %3195 = vmatpush3.bf16.msra.mxu0 %v3569_v30  ;;  %v4302_v17 = vld [vmem:[#allocation3 + $0x18] sm:$0xff]  ;;  %1302 = vst [vmem:[#allocation3 + $0x34] sm:$0xf] %v1217_v9  ;;  %1121 = vst [vmem:[#allocation3 + $0x48] sm:$0xf] %v1111_v13  ;;  %3318 = vmatprep.mubr.bf16.mxu1 %v3575_v6  ;;  %v1382_v22 = vsel %vm4189_vm7, %v2949_v4, %v1381_v12  ;;  %v3580_v40 = vld [vmem:[#allocation11 + $0x118] sm:$0xff]  }
 0x1c3   : > { %v1226_v18 = vrot.slane %v1225_v50, 4  ;;  %1407 = vst [vmem:[#allocation3 + $0x50] sm:$0xf] %v1378_v11  ;;  %1122 = vst [vmem:[#allocation3 + $0x54] sm:$0xf] %v1112_v14  ;;  %3196 = vmatprep.subr.bf16.mxu0 %v3571_v0  ;;  %v4304_v21 = vld [vmem:[#allocation3 + $0x24] sm:$0xff] }
 0x1c4   : > { %v1137_v19 = vld [vmem:[#allocation2 + $0x30] sm:$0xf]  ;;  %v1138_v20 = vld [vmem:[#allocation2 + $0x34] sm:$0x1]  ;;  %v1139_v23 = vld [vmem:[#allocation2 + $0x38] sm:$0xf]  ;;  %v4310_v26 = vcombine.high %v4302_v17, %v4304_v21  ;;  %3327 = vmatpush3.bf16.msra.mxu1 %v3574_v49  ;;  %v4317_v39 = vcombine.low %v4302_v17, %v4304_v21 }
 0x1c5   : > { %v1140_v24 = vld [vmem:[#allocation2 + $0x3c] sm:$0x1]  ;;  %v1233_v25 = vshrl.u32 %v1137_v19, 16  ;;  %v1231_v28 = vsel %vm4195_vm10, %v1226_v18, %v1230_v10  ;;  %1408 = vst [vmem:[#allocation3 + $0x5c] sm:$0xf] %v1382_v22  ;;  %v1236_v15 = vshll.u32 %v1137_v19, 16  ;;  %3328 = vmatprep.subr.bf16.mxu1 %v3579_v8 }
 0x1c6   : > { %1303 = vst [vmem:[#allocation3 + $0x40] sm:$0xf] %v1231_v28  ;;  %v3583_v31 = vld [vmem:[#allocation11 + $0x160] sm:$0xff]   ;;  %v1242_v32 = vshll.u32 %v1138_v20, 16  ;;  %v1247_v33 = vshrl.u32 %v1139_v23, 16  ;;  %v1250_v34 = vshll.u32 %v1139_v23, 16  ;;  %3197 = vmatpush3.bf16.msra.mxu0 %v3572_v5  ;;  %1723 = vmatprep.mubr.bf16.mxu0 %v4310_v26 }
 0x1c7   : > { %v1235_v16 = vrot.slane %v1233_v25, 4  ;;  %v1238_v36 = vrot.slane %v1236_v15, 5  ;;  %v1256_v37 = vshll.u32 %v1140_v24, 16  ;;  %v1324_v38 = vld [vmem:[#allocation2 + $0x40] sm:$0xe]  ;;  %3198 = vmatprep.subr.bf16.mxu0 %v3576_v7  ;;  %v3585_v30 = vld [vmem:[#allocation11 + $0x120] sm:$0xff]   ;;  %v2989_v15 = vcombine.high %v4293_v55, %v4302_v17 }
 0x1c8   : > { %v1249_v41 = vrot.slane %v1247_v33, 4  ;;  %v1252_v42 = vrot.slane %v1250_v34, 5  ;;  %v1325_v43 = vld [vmem:[#allocation2 + $0x44] sm:$0x1]  ;;  %v2950_v44 = vrot.slane %v1324_v38, 9  ;;  %3329 = vmatpush3.bf16.msra.mxu1 %v3579_v8  ;;  %v3589_v49 = vld [vmem:[#allocation11 + $0x168] sm:$0xff]  }
 0x1c9   : > { %v1239_v46 = vor.u32 %v1238_v36, %v1235_v16  ;;  %v1385_v35 = vrot.slane %v1325_v43, 5  ;;  %1724 = vmatmul.mubr.bf16.gmra.mrb[20].mxu0 %v4317_v39  ;;  %v3581_v48 = vld [vmem:[#allocation11 + $0xd8] sm:$0xff]   ;;  %3330 = vmatprep.subr.bf16.mxu1 %v3583_v31  ;;  %v1244_v52 = vrot.slane %v1242_v32, 5  ;;  %v1258_v53 = vrot.slane %v1256_v37, 5  ;;  %v3587_v60 = vld [vmem:[#allocation11 + $0xe0] sm:$0xff]   ;;  %v3593_v50 = vld [vmem:[#allocation11 + $0x170] sm:$0xff]  }
 0x1ca   : > { %v1253_v47 = vor.u32 %v1252_v42, %v1249_v41  ;;  %3199 = vmatpush3.bf16.msra.mxu0 %v3578_v29  ;;  %v4322_v56 = vld [vmem:[#allocation3 + $0x30] sm:$0xff]  ;;  %v3591_v10 = vld [vmem:[#allocation11 + $0xe8] sm:$0xff]   ;;  %v3594_v12 = vld [vmem:[#allocation11 + $0x130] sm:$0xff]   ;;  %v2988_v36 = vcombine.low %v4293_v55, %v4302_v17 }
 0x1cb   : > { %v1240_v51 = vrot.slane %v1239_v46, 4  ;;  %v1386_v54 = vsel %vm4189_vm7, %v2950_v44, %v1385_v35  ;;  %3200 = vmatprep.subr.bf16.mxu0 %v3580_v40  ;;  %v1113_v62 = vld [vmem:[#allocation2 + $0x40] sm:$0xf]  ;;  %v1142_v2 = vld [vmem:[#allocation2 + $0x44] sm:$0x1]  ;;  %v3596_v23 = vld [vmem:[#allocation11 + $0xf0] sm:$0xff]   ;;  %v2992_v38 = vcombine.high %v4304_v21, %v4322_v56  ;;  %v2991_v46 = vcombine.low %v4304_v21, %v4322_v56 }
 0x1cc   : > { %v3584_v57 = vld [vmem:[#allocation3 + $0x50] ss:$12 sps:$4 sm:$0xff]   ;;  %v1254_v58 = vrot.slane %v1253_v47, 4  ;;  %1409 = vst [vmem:[#allocation3 + $0x68] sm:$0xf] %v1386_v54  ;;  %3331 = vmatpush3.bf16.msra.mxu1 %v3583_v31  ;;  %v1270_v9 = vshll.u32 %v1142_v2, 16 }
 0x1cd   : > { %v4324_v59 = vld [vmem:[#allocation3 + $0x3c] sm:$0xff]  ;;  %v1245_v61 = vsel %vm4195_vm10, %v1240_v51, %v1244_v52  ;;  %3319 = vmatmul.mubr.bf16.gmra.mrb[8].mxu1 %v3584_v57  ;;  %1123 = vst [vmem:[#allocation3 + $0x60] sm:$0xf] %v1113_v62  ;;  %v1141_v1 = vld [vmem:[#allocation2 + $0x40] sm:$0xf]  ;;  %3332 = vmatprep.subr.bf16.mxu1 %v3589_v49  ;;  %v3609_v40 = vld [vmem:[#allocation11 + $0x210] sm:$0xff]  }
 0x1ce   : > { %v4330_v63 = vcombine.high %v4322_v56, %v4324_v59  ;;  %v1259_v0 = vsel %vm4195_vm10, %v1254_v58, %v1258_v53  ;;  %1304 = vst [vmem:[#allocation3 + $0x4c] sm:$0xf] %v1245_v61  ;;  %3201 = vmatpush3.bf16.msra.mxu0 %v3581_v48  ;;  %v3588_v3 = vld [vmem:[#allocation3 + $0x14] ss:$12 sps:$4 sm:$0xff]   ;;  %v1261_v4 = vshrl.u32 %v1141_v1, 16  ;;  %v1264_v5 = vshll.u32 %v1141_v1, 16 }
 0x1cf   : > { %1305 = vst [vmem:[#allocation3 + $0x58] sm:$0xf] %v1259_v0  ;;  %3202 = vmatprep.subr.bf16.mxu0 %v3585_v30  ;;  %v4337_v6 = vcombine.low %v4322_v56, %v4324_v59  ;;  %3338 = vmatprep.mubr.bf16.mxu1 %v3588_v3  ;;  %v3597_v13 = vld [vmem:[#allocation11 + $0x178] sm:$0xff]   ;;  %v1272_v18 = vrot.slane %v1270_v9, 5  ;;  %v3601_v29 = vld [vmem:[#allocation11 + $0x200] sm:$0xff]   ;;  %v3605_v33 = vld [vmem:[#allocation11 + $0x208] sm:$0xff]  }
 0x1d0   : > { %1731 = vmatprep.mubr.bf16.mxu0 %v4330_v63  ;;  %v1263_v7 = vrot.slane %v1261_v4, 4  ;;  %v1266_v8 = vrot.slane %v1264_v5, 5  ;;  %3333 = vmatpush3.bf16.msra.mxu1 %v3589_v49  ;;  %v3598_v28 = vld [vmem:[#allocation11 + $0x138] sm:$0xff]   ;;  %v3603_v31 = vld [vmem:[#allocation11 + $0x1c0] sm:$0xff]   ;;  %v3606_v37 = vld [vmem:[#allocation11 + $0x1c8] sm:$0xff]  }
 0x1d1   : > { %1732 = vmatmul.mubr.bf16.gmra.mrb[24].mxu0 %v4337_v6  ;;  %3334 = vmatprep.subr.bf16.mxu1 %v3593_v50  ;;  %v3600_v16 = vld [vmem:[#allocation3 + $0x2c] ss:$12 sps:$4 sm:$0xff]   ;;  %v3602_v32 = vld [vmem:[#allocation3 + $0x44] ss:$12 sps:$4 sm:$0xff]  }
 0x1d2   : > { %3203 = vmatpush3.bf16.msra.mxu0 %v3587_v60  ;;  %v1267_v11 = vor.u32 %v1266_v8, %v1263_v7  ;;  %v3604_v34 = vld [vmem:[#allocation11 + $0x180] sm:$0xff]   ;;  %v3607_v41 = vld [vmem:[#allocation11 + $0x188] sm:$0xff]   ;;  %v3610_v42 = vld [vmem:[#allocation11 + $0x1d0] sm:$0xff]  }
 0x1d3   : > { %3204 = vmatprep.subr.bf16.mxu0 %v3590_v27  ;;  %v3608_v43 = vld [vmem:[#allocation3 + $0x5c] ss:$12 sps:$4 sm:$0xff]   ;;  %v3611_v44 = vld [vmem:[#allocation3 + $0x20] ss:$12 sps:$4 sm:$0xff]   ;;  %v3613_v55 = vld [vmem:[#allocation11 + $0x218] sm:$0xff]  }
 0x1d4   : > { %v1268_v14 = vrot.slane %v1267_v11, 4  ;;  %3335 = vmatpush3.bf16.msra.mxu1 %v3593_v50  ;;  %v3612_v17 = vld [vmem:[#allocation11 + $0x190] sm:$0xff]   ;;  %v3614_v35 = vld [vmem:[#allocation11 + $0x1d8] sm:$0xff]   ;;  %v3616_v48 = vld [vmem:[#allocation11 + $0x220] sm:$0xff]  }
 0x1d5   : > { %v4340_v19 = vld [vmem:[#allocation3 + $0x48] sm:$0xff]  ;;  %3336 = vmatprep.subr.bf16.mxu1 %v3597_v13  ;;  %v3615_v30 = vld [vmem:[#allocation11 + $0x198] sm:$0xff]   ;;  %v3617_v49 = vld [vmem:[#allocation11 + $0x1e0] sm:$0xff]  }
 0x1d6   : > { %v4342_v20 = vld [vmem:[#allocation3 + $0x54] sm:$0xff]  ;;  %3205 = vmatpush3.bf16.msra.mxu0 %v3591_v10  ;;  %v1273_v24 = vsel %vm4195_vm10, %v1268_v14, %v1272_v18  ;;  %v2995_v47 = vcombine.high %v4324_v59, %v4340_v19  ;;  %v3619_v52 = vld [vmem:[#allocation11 + $0x228] sm:$0xff]   ;;  %v2994_v21 = vcombine.low %v4324_v59, %v4340_v19  ;;  %v3622_v57 = vld [vmem:[#allocation11 + $0x230] sm:$0xff]  }
 0x1d7   : > { %v4346_v22 = vcombine.high %v4340_v19, %v4342_v20  ;;  %3206 = vmatprep.subr.bf16.mxu0 %v3594_v12  ;;  %v4352_v25 = vcombine.low %v4340_v19, %v4342_v20  ;;  %1306 = vst [vmem:[#allocation3 + $0x64] sm:$0xf] %v1273_v24  ;;  %v3618_v53 = vld [vmem:[#allocation11 + $0x1a0] sm:$0xff]   ;;  %v3620_v54 = vld [vmem:[#allocation11 + $0x1e8] sm:$0xff]   ;;  %v3623_v60 = vld [vmem:[#allocation11 + $0x1f0] sm:$0xff]  }
 0x1d8   : > { %3337 = vmatpush3.bf16.msra.mxu1 %v3597_v13  ;;  %v3621_v58 = vld [vmem:[#allocation11 + $0x1a8] sm:$0xff]   ;;  %v3625_v61 = vld [vmem:[#allocation11 + $0x238] sm:$0xff]   ;;  %v3624_v62 = vld [vmem:[#allocation11 + $0x1b0] sm:$0xff]  }
 0x1d9   : > { %1739 = vmatprep.mubr.bf16.mxu0 %v4346_v22  ;;  %3346 = vmatprep.subr.bf16.mxu1 %v3601_v29  ;;  %v3626_v27 = vld [vmem:[#allocation11 + $0x1f8] sm:$0xff]   ;;  %v3628_v1 = vld [vmem:[#allocation3 + $0x38] ss:$12 sps:$4 sm:$0xff]  }
 0x1da   : > { %1740 = vmatmul.mubr.bf16.gmra.mrb[28].mxu0 %v4352_v25  ;;  %v3627_v0 = vld [vmem:[#allocation11 + $0x1b8] sm:$0xff]  }
 0x1db   : > { %3207 = vmatpush3.bf16.msra.mxu0 %v3596_v23  ;;  %2135 = vmatprep.mubr.bf16.mxu0 %v2989_v15  ;;  %v3629_v2 = vld [vmem:[#allocation3 + $0x50] ss:$12 sps:$4 sm:$0xff]   ;;  %v3630_v3 = vld [vmem:[#allocation3 + $0x68] ss:$12 sps:$4 sm:$0xff]  }
 0x1dc   : > { %3208 = vmatprep.subr.bf16.mxu0 %v3598_v28  ;;  %3339 = vmatmul.mubr.bf16.vlgmr.msra.gmra.mrb[4].mxu1 %v3600_v16 }
 0x1dd   : > { %3342 = vmatprep.mubr.bf16.mxu1 %v3602_v32  ;;  %3347 = vmatpush3.bf16.msra.mxu1 %v3601_v29 }
 0x1de   : > { %3348 = vmatprep.subr.bf16.mxu1 %v3605_v33  ;;  %v1844_v51 = vld [vmem:[#allocation3 + $0x60] sm:$0xff] }
 0x1df   : > { %3209 = vmatpush3.bf16.msra.mxu0 %v3599_v45  ;;  %v2998_v56 = vcombine.high %v4342_v20, %v1844_v51  ;;  %v2997_v59 = vcombine.low %v4342_v20, %v1844_v51 }
 0x1e0   : > { %3246 = vmatprep.subr.bf16.mxu0 %v3603_v31 }
 0x1e1   : > { %3349 = vmatpush3.bf16.msra.mxu1 %v3605_v33 }
 0x1e2   : > { %2136 = vmatmul.mubr.bf16.vlgmr.msra.gmra.mrb[32].mxu0 %v2988_v36  ;;  %3350 = vmatprep.subr.bf16.mxu1 %v3609_v40 }
 0x1e3   : > { %3247 = vmatpush3.bf16.msra.mxu0 %v3604_v34  ;;  %2143 = vmatprep.mubr.bf16.mxu0 %v2992_v38 }
 0x1e4   : > { %3248 = vmatprep.subr.bf16.mxu0 %v3606_v37  ;;  %3343 = vmatmul.mubr.bf16.gmra.mrb[8].mxu1 %v3608_v43 }
 0x1e5   : > { %3362 = vmatprep.mubr.bf16.mxu1 %v3611_v44  ;;  %3351 = vmatpush3.bf16.msra.mxu1 %v3609_v40 }
 0x1e6   : > { %3352 = vmatprep.subr.bf16.mxu1 %v3613_v55 }
 0x1e7   : > { %3249 = vmatpush3.bf16.msra.mxu0 %v3607_v41 }
 0x1e8   : > { %3250 = vmatprep.subr.bf16.mxu0 %v3610_v42 }
 0x1e9   : > { %3353 = vmatpush3.bf16.msra.mxu1 %v3613_v55 }
 0x1ea   : > { %2144 = vmatmul.mubr.bf16.gmra.mrb[36].mxu0 %v2991_v46  ;;  %3354 = vmatprep.subr.bf16.mxu1 %v3616_v48 }
 0x1eb   : > { %3251 = vmatpush3.bf16.msra.mxu0 %v3612_v17  ;;  %2151 = vmatprep.mubr.bf16.mxu0 %v2995_v47 }
 0x1ec   : > { %3252 = vmatprep.subr.bf16.mxu0 %v3614_v35 }
 0x1ed   : > { %3355 = vmatpush3.bf16.msra.mxu1 %v3616_v48 }
 0x1ee   : > { %3356 = vmatprep.subr.bf16.mxu1 %v3619_v52 }
 0x1ef   : > { %3253 = vmatpush3.bf16.msra.mxu0 %v3615_v30 }
 0x1f0   : > { %3254 = vmatprep.subr.bf16.mxu0 %v3617_v49 }
 0x1f1   : > { %3357 = vmatpush3.bf16.msra.mxu1 %v3619_v52 }
 0x1f2   : > { %2152 = vmatmul.mubr.bf16.gmra.mrb[40].mxu0 %v2994_v21  ;;  %3358 = vmatprep.subr.bf16.mxu1 %v3622_v57 }
 0x1f3   : > { %3255 = vmatpush3.bf16.msra.mxu0 %v3618_v53  ;;  %2159 = vmatprep.mubr.bf16.mxu0 %v2998_v56 }
 0x1f4   : > { %3256 = vmatprep.subr.bf16.mxu0 %v3620_v54 }
 0x1f5   : > { %3359 = vmatpush3.bf16.msra.mxu1 %v3622_v57 }
 0x1f6   : > { %3360 = vmatprep.subr.bf16.mxu1 %v3625_v61 }
 0x1f7   : > { %3257 = vmatpush3.bf16.msra.mxu0 %v3621_v58 }
 0x1f8   : > { %3258 = vmatprep.subr.bf16.mxu0 %v3623_v60 }
 0x1f9   : > { %3361 = vmatpush3.bf16.msra.mxu1 %v3625_v61 }
 0x1fa   : > { %2160 = vmatmul.mubr.bf16.gmra.mrb[44].mxu0 %v2997_v59 }
 0x1fb   : > { %3259 = vmatpush3.bf16.msra.mxu0 %v3624_v62  ;;  %2563 = vmatprep.mubr.bf16.mxu0 %v4310_v26  ;;  %v2272_v26 = vld [vmem:[#allocation3 + $0x6c] sm:$0xff] }
 0x1fc   : > { %3260 = vmatprep.subr.bf16.mxu0 %v3626_v27  ;;  %3363 = vmatmul.mubr.bf16.vlgmr.msra.gmra.mrb[4].mxu1 %v3628_v1  ;;  %v3034_v4 = vcombine.high %v1844_v51, %v2272_v26  ;;  %v3033_v5 = vcombine.low %v1844_v51, %v2272_v26 }
 0x1fd   : > { %3366 = vmatprep.mubr.bf16.mxu1 %v3629_v2 }
 0x1ff   : > { %3261 = vmatpush3.bf16.msra.mxu0 %v3627_v0 }
 0x202   : > { %2564 = vmatmul.mubr.bf16.vlgmr.msra.gmra.mrb[48].mxu0 %v4317_v39 }
 0x203   : > { %2571 = vmatprep.mubr.bf16.mxu0 %v4330_v63 }
 0x204   : > { %3367 = vmatmul.mubr.bf16.gmra.mrb[8].mxu1 %v3630_v3 }
 0x20a   : > { %2572 = vmatmul.mubr.bf16.gmra.mrb[52].mxu0 %v4337_v6 }
 0x20b   : > { %2579 = vmatprep.mubr.bf16.mxu0 %v4346_v22 }
 0x212   : > { %2580 = vmatmul.mubr.bf16.gmra.mrb[56].mxu0 %v4352_v25 }
 0x213   : > { %2587 = vmatprep.mubr.bf16.mxu0 %v3034_v4 }
 0x21a   : > { %2588 = vmatmul.mubr.bf16.gmra.mrb[60].mxu0 %v3033_v5 }
 0x21b   : > { %3758 = shalt.err (!%p3755_p4)
}
 0x21c   : > { %s3759_s10 = scalar_lea.hbm %s4382_s16, 1024  ;;  %s3763_s21 = scalar_lea.hbm %s4490_s7, 2048 }
 0x21d   : > { %p3760_p9 = scmp.ne.s32.totalorder %s4382_s16, %s3759_s10  ;;  %p3764_p8 = scmp.lt.u32.totalorder %s4382_s16, %s4490_s7 }
 0x21e   : > { %p3765_p13 = scmp.lt.u32.totalorder %s3763_s21, %s3759_s10  ;;  %p3767_p10 = scmp.lt.u32.totalorder %s3759_s10, %s4382_s16 }
 0x21f   : > { %p3761_p0 = pnand %p3760_p9, %p4065_p5 }
 0x220   : > { %p3766_p6 = por %p3765_p13, %p3764_p8 }
 0x221   : > { %p3762_p11 = pneg %p3761_p0 }
 0x222   : > { %p3768_p3 = por %p3767_p10, %p3766_p6 }
 0x224   : > { %p3769_p7 = pnand %p3768_p3, %p3762_p11 }
 0x226   : > { %3772 = shalt.err (!%p3769_p7)
}
 0x227   : > { %s3863_s19 = smov 128   ;;  %s3864_s11 = smov 8  }
 0x228   : > { %3424 = dma.vmem_to_hbm [thread:$0]  (%p4065_p5), %s4385_s27, 1024, %s4382_s16, %s2709_s12, %s3863_s19, %s3863_s19, %s3864_s11  }
 0x229   : > { %s4418_s12 = scalar_lea.vmem [#allocation14], %s4116_s20  ;;  %s4433_s17 = scalar_lea.hbm %s4491_s8, %s3078_s18 }
 0x22a   : > { %s2743_s20 = sshll.u32 %s4418_s12, 4  ;;  %s2714_s15 = scalar_lea.sflag [#allocation15], %s4113_s25  ;;  %s4435_s20 = int_to_ptr.vmem [resolvable:$true] %s2743_s20 }
 0x22b   : > { %s3773_s21 = scalar_lea.vmem %s4435_s20, 1024  ;;  %s3865_s14 = smov [#allocation14]  }
 0x22c   : > { %p3774_p12 = scmp.ne.s32.totalorder %s4435_s20, %s3773_s21  ;;  %s3777_s24 = sshll.u32 %s3865_s14, 4  ;;  %s3778_s24 = int_to_ptr.vmem [resolvable:$false] %s3777_s24 }
 0x22d   : > { %s3779_s9 = scalar_lea.vmem %s3778_s24, 2048  ;;  %p3780_p4 = scmp.lt.s32.totalorder %s4435_s20, %s3778_s24 }
 0x22e   : > { %p3775_p1 = pnand %p3774_p12, %p4065_p5  ;;  %p3781_p9 = scmp.lt.s32.totalorder %s3779_s9, %s3773_s21 }
 0x230   : > { %p3776_p2 = pneg %p3775_p1  ;;  %p3782_p0 = por %p3781_p9, %p3780_p4 }
 0x232   : > { %p3783_p11 = pnand %p3782_p0, %p3776_p2 }
 0x294   : > { %v3158_v39 = vpop.f32.mrb[16].mxu0 }
 0x295   : > { %v3159_v63 = vpop.f32.mrb[17].mxu0 }
 0x296   : > { %v3160_v6 = vadd.f32 %v3159_v63, %v3158_v39  ;;  %v3161_v50 = vpop.f32.mrb[18].mxu0 }
 0x297   : > { %v3162_v7 = vpop.f32.mrb[19].mxu0 }
 0x298   : > { %v3163_v8 = vadd.f32 %v3162_v7, %v3161_v50  ;;  %v3060_v50 = vld [vmem:[%s4489_s6] ss:$0 sm:$0xff] }
 0x29c   : > { %v3164_v9 = vpop.f32.mrb[20].mxu0 }
 0x29d   : > { %v3165_v10 = vpop.f32.mrb[21].mxu0 }
 0x29e   : > { %v3166_v11 = vadd.f32 %v3165_v10, %v3164_v9  ;;  %v3167_v12 = vpop.f32.mrb[22].mxu0 }
 0x29f   : > { %v3168_v13 = vpop.f32.mrb[23].mxu0 }
 0x2a0   : > { %v3169_v14 = vadd.f32 %v3168_v13, %v3167_v12 }
 0x2a4   : > { %v3170_v18 = vpop.f32.mrb[24].mxu0 }
 0x2a5   : > { %v3171_v19 = vpop.f32.mrb[25].mxu0 }
 0x2a6   : > { %v3172_v20 = vadd.f32 %v3171_v19, %v3170_v18  ;;  %v3173_v22 = vpop.f32.mrb[26].mxu0 }
 0x2a7   : > { %v3174_v23 = vpop.f32.mrb[27].mxu0 }
 0x2a8   : > { %v3175_v24 = vadd.f32 %v3174_v23, %v3173_v22 }
 0x2ad   : > { %v3176_v25 = vpop.f32.mrb[28].mxu0 }
 0x2ae   : > { %v3177_v28 = vpop.f32.mrb[29].mxu0 }
 0x2af   : > { %v3178_v15 = vadd.f32 %v3177_v28, %v3176_v25  ;;  %v3179_v29 = vpop.f32.mrb[30].mxu0 }
 0x2b0   : > { %v3180_v45 = vpop.f32.mrb[31].mxu0 }
 0x2b1   : > { %v3181_v31 = vadd.f32 %v3180_v45, %v3179_v29 }
 0x2b5   : > { %v3210_v16 = vpop.f32.mrb[32].mxu0 }
 0x2b6   : > { %v3211_v32 = vpop.f32.mrb[33].mxu0 }
 0x2b7   : > { %v3212_v33 = vadd.f32 %v3211_v32, %v3210_v16  ;;  %v3213_v34 = vpop.f32.mrb[34].mxu0 }
 0x2b8   : > { %v3214_v36 = vpop.f32.mrb[35].mxu0 }
 0x2b9   : > { %v3373_v37 = vadd.f32 %v3212_v33, %v3160_v6  ;;  %v3215_v38 = vadd.f32 %v3214_v36, %v3213_v34 }
 0x2bb   : > { %v3379_v40 = vadd.f32 %v3215_v38, %v3163_v8 }
 0x2bd   : > { %v3216_v41 = vpop.f32.mrb[36].mxu0 }
 0x2be   : > { %v3217_v42 = vpop.f32.mrb[37].mxu0 }
 0x2bf   : > { %v3218_v43 = vadd.f32 %v3217_v42, %v3216_v41  ;;  %v3219_v44 = vpop.f32.mrb[38].mxu0 }
 0x2c0   : > { %v3220_v55 = vpop.f32.mrb[39].mxu0 }
 0x2c1   : > { %v3370_v17 = vadd.f32 %v3218_v43, %v3166_v11  ;;  %v3221_v46 = vadd.f32 %v3220_v55, %v3219_v44 }
 0x2c3   : > { %v3376_v35 = vadd.f32 %v3221_v46, %v3169_v14 }
 0x2c5   : > { %v3222_v47 = vpop.f32.mrb[40].mxu0 }
 0x2c6   : > { %v3223_v48 = vpop.f32.mrb[41].mxu0 }
 0x2c7   : > { %v3224_v30 = vadd.f32 %v3223_v48, %v3222_v47  ;;  %v3225_v49 = vpop.f32.mrb[42].mxu0 }
 0x2c8   : > { %v3226_v51 = vpop.f32.mrb[43].mxu0 }
 0x2c9   : > { %v3385_v52 = vadd.f32 %v3224_v30, %v3172_v20  ;;  %v3227_v53 = vadd.f32 %v3226_v51, %v3225_v49 }
 0x2cb   : > { %v3391_v21 = vadd.f32 %v3227_v53, %v3175_v24 }
 0x2cd   : > { %v3228_v54 = vpop.f32.mrb[44].mxu0 }
 0x2ce   : > { %v3229_v56 = vpop.f32.mrb[45].mxu0 }
 0x2cf   : > { %v3230_v57 = vadd.f32 %v3229_v56, %v3228_v54  ;;  %v3231_v58 = vpop.f32.mrb[46].mxu0  ;;  %v3364_v27 = vpop.f32.mrb[4].mxu1 }
 0x2d0   : > { %v3232_v60 = vpop.f32.mrb[47].mxu0  ;;  %v2630_v0 = vpop.f32.mrb[5].mxu1 }
 0x2d1   : > { %v3382_v61 = vadd.f32 %v3230_v57, %v3178_v15  ;;  %v3233_v62 = vadd.f32 %v3232_v60, %v3231_v58  ;;  %v3365_v2 = vpop.f32.mrb[6].mxu1 }
 0x2d2   : > { %v2633_v26 = vpop.f32.mrb[7].mxu1 }
 0x2d3   : > { %v3388_v59 = vadd.f32 %v3233_v62, %v3181_v31 }
 0x2d5   : > { %v3262_v1 = vpop.f32.mrb[48].mxu0 }
 0x2d6   : > { %v3263_v3 = vpop.f32.mrb[49].mxu0 }
 0x2d7   : > { %v3264_v4 = vadd.f32 %v3263_v3, %v3262_v1  ;;  %v3265_v5 = vpop.f32.mrb[50].mxu0  ;;  %v3368_v9 = vpop.f32.mrb[8].mxu1 }
 0x2d8   : > { %v3266_v39 = vpop.f32.mrb[51].mxu0  ;;  %v2646_v10 = vpop.f32.mrb[9].mxu1 }
 0x2d9   : > { %v3374_v63 = vadd.f32 %v3373_v37, %v3264_v4  ;;  %v3267_v6 = vadd.f32 %v3266_v39, %v3265_v5  ;;  %v3369_v14 = vpop.f32.mrb[10].mxu1 }
 0x2da   : > { %v2649_v19 = vpop.f32.mrb[11].mxu1 }
 0x2db   : > { %v3375_v7 = vadd.f32 %v3374_v63, %v2630_v0  ;;  %v3380_v8 = vadd.f32 %v3379_v40, %v3267_v6 }
 0x2dd   : > { %v2692_v11 = vadd.f32 %v3375_v7, %v3060_v50  ;;  %v3381_v12 = vadd.f32 %v3380_v8, %v2633_v26  ;;  %v3268_v13 = vpop.f32.mrb[52].mxu0 }
 0x2de   : > { %v3269_v18 = vpop.f32.mrb[53].mxu0 }
 0x2df   : > { %2700 = vst [vmem:[%s4418_s12] sm:$0xff] %v2692_v11  ;;  %v2693_v20 = vadd.f32 %v3381_v12, %v3060_v50  ;;  %v3270_v22 = vadd.f32 %v3269_v18, %v3268_v13  ;;  %v3271_v23 = vpop.f32.mrb[54].mxu0 }
 0x2e0   : > { %v3272_v24 = vpop.f32.mrb[55].mxu0 }
 0x2e1   : > { %2701 = vst [vmem:[%s4418_s12 + $0x8] sm:$0xff] %v2693_v20  ;;  %v3371_v25 = vadd.f32 %v3370_v17, %v3270_v22  ;;  %v3273_v28 = vadd.f32 %v3272_v24, %v3271_v23 }
 0x2e3   : > { %v3372_v15 = vadd.f32 %v3371_v25, %v3364_v27  ;;  %v3377_v29 = vadd.f32 %v3376_v35, %v3273_v28 }
 0x2e5   : > { %v2694_v45 = vadd.f32 %v3372_v15, %v3060_v50  ;;  %v3378_v31 = vadd.f32 %v3377_v29, %v3365_v2  ;;  %v3274_v16 = vpop.f32.mrb[56].mxu0 }
 0x2e6   : > { %v3275_v32 = vpop.f32.mrb[57].mxu0 }
 0x2e7   : > { %2702 = vst [vmem:[%s4418_s12 + $0x10] sm:$0xff] %v2694_v45  ;;  %v2695_v33 = vadd.f32 %v3378_v31, %v3060_v50  ;;  %v3276_v34 = vadd.f32 %v3275_v32, %v3274_v16  ;;  %v3277_v36 = vpop.f32.mrb[58].mxu0 }
 0x2e8   : > { %v3278_v37 = vpop.f32.mrb[59].mxu0 }
 0x2e9   : > { %2703 = vst [vmem:[%s4418_s12 + $0x18] sm:$0xff] %v2695_v33  ;;  %v3386_v38 = vadd.f32 %v3385_v52, %v3276_v34  ;;  %v3279_v40 = vadd.f32 %v3278_v37, %v3277_v36 }
 0x2eb   : > { %v3387_v41 = vadd.f32 %v3386_v38, %v2646_v10  ;;  %v3392_v42 = vadd.f32 %v3391_v21, %v3279_v40 }
 0x2ed   : > { %v2696_v43 = vadd.f32 %v3387_v41, %v3060_v50  ;;  %v3393_v44 = vadd.f32 %v3392_v42, %v2649_v19  ;;  %v3280_v55 = vpop.f32.mrb[60].mxu0 }
 0x2ee   : > { %v3281_v17 = vpop.f32.mrb[61].mxu0 }
 0x2ef   : > { %2704 = vst [vmem:[%s4418_s12 + $0x20] sm:$0xff] %v2696_v43  ;;  %v2697_v46 = vadd.f32 %v3393_v44, %v3060_v50  ;;  %v3282_v35 = vadd.f32 %v3281_v17, %v3280_v55  ;;  %v3283_v47 = vpop.f32.mrb[62].mxu0 }
 0x2f0   : > { %v3284_v48 = vpop.f32.mrb[63].mxu0 }
 0x2f1   : > { %2705 = vst [vmem:[%s4418_s12 + $0x28] sm:$0xff] %v2697_v46  ;;  %v3383_v30 = vadd.f32 %v3382_v61, %v3282_v35  ;;  %v3285_v49 = vadd.f32 %v3284_v48, %v3283_v47 }
 0x2f3   : > { %v3384_v51 = vadd.f32 %v3383_v30, %v3368_v9  ;;  %v3389_v52 = vadd.f32 %v3388_v59, %v3285_v49 }
 0x2f5   : > { %v2698_v53 = vadd.f32 %v3384_v51, %v3060_v50  ;;  %v3390_v21 = vadd.f32 %v3389_v52, %v3369_v14 }
 0x2f7   : > { %2706 = vst [vmem:[%s4418_s12 + $0x30] sm:$0xff] %v2698_v53  ;;  %v2699_v54 = vadd.f32 %v3390_v21, %v3060_v50 }
 0x2f9   : > { %2707 = vst [vmem:[%s4418_s12 + $0x38] sm:$0xff] %v2699_v54 }
 0x2fa   : > { %3786 = shalt.err (!%p3783_p11)
}
 0x2fb   : > { %s3787_s18 = scalar_lea.hbm %s4433_s17, 1024  ;;  %s3791_s12 = scalar_lea.hbm %s4491_s8, 2048 }
 0x2fc   : > { %p3788_p8 = scmp.ne.s32.totalorder %s4433_s17, %s3787_s18  ;;  %p3792_p10 = scmp.lt.u32.totalorder %s4433_s17, %s4491_s8 }
 0x2fd   : > { %p3793_p3 = scmp.lt.u32.totalorder %s3791_s12, %s3787_s18  ;;  %p3795_p12 = scmp.lt.u32.totalorder %s3787_s18, %s4433_s17 }
 0x2fe   : > { %p3789_p13 = pnand %p3788_p8, %p4065_p5 }
 0x2ff   : > { %p3794_p7 = por %p3793_p3, %p3792_p10 }
 0x300   : > { %p3790_p6 = pneg %p3789_p13 }
 0x301   : > { %p3796_p1 = por %p3795_p12, %p3794_p7 }
 0x303   : > { %p3797_p2 = pnand %p3796_p1, %p3790_p6 }
 0x305   : > { %3800 = shalt.err (!%p3797_p2)
}
 0x306   : > { %3425 = dma.vmem_to_hbm [thread:$0]  (%p4065_p5), %s4435_s20, 1024, %s4433_s17, %s2714_s15, %s3863_s19, %s3863_s19, %s3864_s11  }
 0x307 PF: > { %s4523_s21 = sld [smem:[#allocation21_spill]]  ;;  %s4524_s14 = sld [smem:[#allocation22_spill]] }
 0x308   : > { %p4526_p9 = scmp.ge.s32.totalorder %s3851_s30, 2 }
 0x30d   : > { %s2758_s24 = sand.u32 1, %s4523_s21   ;;  %p4525_p4 = scmp.ne.s32.totalorder %s4524_s14, 0 }
 0x30e   : > { %s2759_s9 = scalar_lea.sflag [#allocation7], %s2758_s24 }
 0x30f   : > { %p3443_p0 = pnand %p4526_p9, %p4525_p4 }
 0x311   : > { %3830 = dma.done.wait (!%p3443_p0), %s2759_s9, 1024  }
 0x312   : > { %3832 = vsyncadd (!%p3443_p0), %s2759_s9, 4294966272  ;;  %s2768_s23 = scalar_lea.sflag [#allocation15], %s2758_s24 }
 0x313   : > { %3834 = dma.done.wait (!%p3443_p0), %s2768_s23, 1024  }
 0x314   : > { %3836 = vsyncadd (!%p3443_p0), %s2768_s23, 4294966272  ;;  %p27_p5 = scmp.ge.s32.totalorder %s4051_s26, 4   ;;  %s4527_s27 = smov %s3843_s28 }
 0x315   : > { %s4528_s28 = smov %s3847_s29  ;;  %s4529_s29 = smov %s4061_s22 }
 0x316   : > { %s4530_s30 = smov %s4051_s26  ;;  %29 = sbr.rel (!%p27_p5) target bundleno = 9 (0x9), region = 128 }
 0x31d   :  { %2773 = vsyncpa [#allocation6], 1 }
 0x31e   :  { %2775 = vsyncpa [#allocation6 + $0x1], 1 }
 0x31f   :  { %2776 = vsyncpa [#allocation9], 1 }
 0x320   :  { %2777 = vsyncpa [#allocation12], 1 }
 0x321   :  { %2778 = vsyncpa [#allocation7], 1 }
 0x322   :  { %2780 = vsyncpa [#allocation7 + $0x1], 1 }
 0x323   :  { %2781 = vsyncpa [#allocation15], 1 }
 0x324   :  { %2783 = vsyncpa [#allocation15 + $0x1], 1 }

</bundles_post_ra>
